<compile_context>
chip_gen: v5e
topology: v5e:2x2
jax: 0.10.0
libtpu: 0.0.40
codegen_flags: <defaults>
</compile_context>

<pallas_src>
import functools

import jax
import jax.numpy as jnp
from jax import lax
from jax.experimental import pallas as pl
from jax.experimental.pallas import tpu as pltpu

EPS = 1e-5
NEG_INF = -1e9  # stand-in for float('-inf') in the causal mask


def _layer_norm(x, g, b):
    """f32 LayerNorm over the last dim; g/b are (1, D)."""
    x = x.astype(jnp.float32)
    mu = jnp.mean(x, axis=-1, keepdims=True)
    var = jnp.mean(jnp.square(x - mu), axis=-1, keepdims=True)
    return (x - mu) * lax.rsqrt(var + EPS) * g + b


# ----------------------------------------------------------------------------
# Kernel 1: one residual attention block for a (Bt, L, D) batch tile.
# ----------------------------------------------------------------------------
def _resblock_kernel(n_heads,
                     x_ref,
                     ln1_g, ln1_b,
                     w_qkv, b_qkv, wo, bo,
                     ln2_g, ln2_b,
                     wfc, bfc, wpj, bpj,
                     o_ref):
    xb = x_ref[...]                                  # (Bt, L, D) f32
    Bt, L, D = xb.shape
    hd = D // n_heads

    # Fold the batch tile into the matmul M dimension.
    x = xb.reshape(Bt * L, D)                        # (Bt*L, D) f32

    # ---- attention branch: x + MHA(LN1(x)) with causal mask ----
    xn = _layer_norm(x, ln1_g[...], ln1_b[...])
    qkv = jnp.dot(xn.astype(jnp.bfloat16), w_qkv[...],
                  preferred_element_type=jnp.float32) + b_qkv[...]   # (Bt*L, 3D)
    # 1/sqrt(hd) scale is already folded into the q part of w_qkv/b_qkv.
    q = qkv[:, :D].reshape(Bt, L, D).astype(jnp.bfloat16)
    k = qkv[:, D:2 * D].reshape(Bt, L, D).astype(jnp.bfloat16)
    v = qkv[:, 2 * D:].reshape(Bt, L, D).astype(jnp.bfloat16)

    row = lax.broadcasted_iota(jnp.int32, (L, L), 0)
    col = lax.broadcasted_iota(jnp.int32, (L, L), 1)
    causal = jnp.where(col <= row, 0.0, NEG_INF)[None]              # (1, L, L)

    # Per-head loop (static); each head is batched over the Bt tile and the
    # scores contraction consumes K in transposed form (no explicit .T).
    # The per-head output is pushed through its slice of w_out and summed,
    # so no lane-axis concatenate is materialized.
    attn = jnp.zeros((Bt * L, D), jnp.float32)
    for h in range(n_heads):
        qs = q[:, :, h * hd:(h + 1) * hd]            # (Bt, L, hd) bf16
        ks = k[:, :, h * hd:(h + 1) * hd]
        vs = v[:, :, h * hd:(h + 1) * hd]
        s = jnp.einsum('bld,bmd->blm', qs, ks,
                       preferred_element_type=jnp.float32) + causal  # (Bt, L, L) f32
        m = jnp.max(s, axis=-1, keepdims=True)
        p = jnp.exp(s - m)
        inv = pl.reciprocal(jnp.sum(p, axis=-1, keepdims=True), approx=True)
        p = (p * inv).astype(jnp.bfloat16)
        oh = jnp.einsum('blm,bmd->bld', p, vs,
                        preferred_element_type=jnp.float32)          # (Bt, L, hd)
        attn = attn + jnp.dot(
            oh.reshape(Bt * L, hd).astype(jnp.bfloat16),
            wo[h * hd:(h + 1) * hd, :],
            preferred_element_type=jnp.float32)
    x = x + attn + bo[...]

    # ---- MLP branch: x + c_proj(QuickGELU(c_fc(LN2(x)))) ----
    xn2 = _layer_norm(x, ln2_g[...], ln2_b[...])
    h1 = jnp.dot(xn2.astype(jnp.bfloat16), wfc[...],
                 preferred_element_type=jnp.float32) + bfc[...]
    h1 = h1 * jax.nn.sigmoid(1.702 * h1)             # QuickGELU (f32)
    h2 = jnp.dot(h1.astype(jnp.bfloat16), wpj[...],
                 preferred_element_type=jnp.float32) + bpj[...]
    o_ref[...] = (x + h2).reshape(Bt, L, D)


_LAYER_PARAM_ORDER = ('ln1_g', 'ln1_b', 'w_qkv', 'b_qkv', 'wo', 'bo',
                      'ln2_g', 'ln2_b', 'wfc', 'bfc', 'wpj', 'bpj')


def residual_block(x, lp, n_heads, block_batch):
    B, L, D = x.shape
    bt = max(1, min(block_batch, B))
    while B % bt:
        bt -= 1
    weight_args = [lp[k] for k in _LAYER_PARAM_ORDER]
    in_specs = [pl.BlockSpec((bt, L, D), lambda b: (b, 0, 0))]
    for w in weight_args:                            # all params are 2-D
        in_specs.append(pl.BlockSpec(w.shape, lambda b: (0, 0)))
    return pl.pallas_call(
        functools.partial(_resblock_kernel, n_heads),
        out_shape=jax.ShapeDtypeStruct((B, L, D), x.dtype),
        grid=(B // bt,),
        in_specs=in_specs,
        out_specs=pl.BlockSpec((bt, L, D), lambda b: (b, 0, 0)),
        compiler_params=pltpu.CompilerParams(
            dimension_semantics=("parallel",),
            vmem_limit_bytes=48 * 1024 * 1024),
    )(x, *weight_args)


# ----------------------------------------------------------------------------
# Kernel 2: ln_final on the gathered EOT rows + text_projection, one step.
# ----------------------------------------------------------------------------
def _final_kernel(x_ref, g_ref, b_ref, proj_ref, o_ref):
    xn = _layer_norm(x_ref[...], g_ref[...], b_ref[...])
    o_ref[...] = jnp.dot(xn.astype(jnp.bfloat16), proj_ref[...],
                         preferred_element_type=jnp.float32)


def ln_final_project(x, eot_idx, g, b, proj):
    B, L, D = x.shape
    P = proj.shape[1]
    # Tiny O(B*D) gather done in plain JAX (per perf review), so the Pallas
    # kernel sees a dense (B, D) block and does a single batched matmul
    # instead of B single-row (1, D) @ (D, P) steps with full-row DMAs.
    sel = jnp.take_along_axis(x, eot_idx[:, None, None].astype(jnp.int32),
                              axis=1).reshape(B, D)
    return pl.pallas_call(
        _final_kernel,
        out_shape=jax.ShapeDtypeStruct((B, P), jnp.float32),
    )(sel, g, b, proj)


# ----------------------------------------------------------------------------
# Full TextEncoder.forward
# ----------------------------------------------------------------------------
def text_encoder_forward(prompts, tokenized_prompts, kparams, n_heads,
                         block_batch=2):
    # x = prompts + positional_embedding  (trivial elementwise glue)
    x = prompts + kparams['pos_emb'][None, :, :]
    for lp in kparams['layers']:
        x = residual_block(x, lp, n_heads, block_batch)
    eot = jnp.argmax(tokenized_prompts, axis=-1).astype(jnp.int32)
    return ln_final_project(x, eot, kparams['lnf_g'], kparams['lnf_b'],
                            kparams['text_projection'])


# ----------------------------------------------------------------------------
# Host-side parameter preparation for the kernels:
#   * fuse wq/wk/wv -> w_qkv (D, 3D), bq/bk/bv -> b_qkv (1, 3D)
#   * fold 1/sqrt(head_dim) into the q slice of w_qkv / b_qkv
#   * cast matmul weights to bfloat16 (LN params / biases stay f32)
# ----------------------------------------------------------------------------
def prepare_kernel_params(params, n_heads):
    D = params['pos_emb'].shape[1]
    hd = D // n_heads
    scale = 1.0 / float(hd) ** 0.5
    layers = []
    for lp in params['layers']:
        w_qkv = jnp.concatenate([lp['wq'] * scale, lp['wk'], lp['wv']], axis=1)
        b_qkv = jnp.concatenate([lp['bq'] * scale, lp['bk'], lp['bv']], axis=1)
        layers.append({
            'ln1_g': lp['ln1_g'], 'ln1_b': lp['ln1_b'],
            'w_qkv': w_qkv.astype(jnp.bfloat16),
            'b_qkv': b_qkv.astype(jnp.float32),
            'wo': lp['wo'].astype(jnp.bfloat16), 'bo': lp['bo'],
            'ln2_g': lp['ln2_g'], 'ln2_b': lp['ln2_b'],
            'wfc': lp['wfc'].astype(jnp.bfloat16), 'bfc': lp['bfc'],
            'wpj': lp['wpj'].astype(jnp.bfloat16), 'bpj': lp['bpj'],
        })
    return {
        'pos_emb': params['pos_emb'],
        'lnf_g': params['lnf_g'], 'lnf_b': params['lnf_b'],
        'text_projection': params['text_projection'].astype(jnp.bfloat16),
        'layers': layers,
    }


# ----------------------------------------------------------------------------
# Pure-JAX f32 reference (same math) for correctness check.
# ----------------------------------------------------------------------------
def _ref_block_single(x, lp, n_heads):
    L, D = x.shape
    hd = D // n_heads
    scale = 1.0 / float(hd) ** 0.5
    xn = _layer_norm(x, lp['ln1_g'], lp['ln1_b'])
    q = xn @ lp['wq'] + lp['bq']
    k = xn @ lp['wk'] + lp['bk']
    v = xn @ lp['wv'] + lp['bv']
    row = lax.broadcasted_iota(jnp.int32, (L, L), 0)
    col = lax.broadcasted_iota(jnp.int32, (L, L), 1)
    causal = jnp.where(col <= row, 0.0, NEG_INF)
    outs = []
    for h in range(n_heads):
        qs = q[:, h * hd:(h + 1) * hd] * scale
        ks = k[:, h * hd:(h + 1) * hd]
        vs = v[:, h * hd:(h + 1) * hd]
        s = qs @ ks.T + causal
        p = jax.nn.softmax(s, axis=-1)
        outs.append(p @ vs)
    attn = jnp.concatenate(outs, axis=-1) @ lp['wo'] + lp['bo']
    x = x + attn
    xn2 = _layer_norm(x, lp['ln2_g'], lp['ln2_b'])
    h1 = xn2 @ lp['wfc'] + lp['bfc']
    h1 = h1 * jax.nn.sigmoid(1.702 * h1)
    return x + h1 @ lp['wpj'] + lp['bpj']


def ref_forward(prompts, tokenized, params, n_heads):
    x = prompts + params['pos_emb'][None, :, :]
    for lp in params['layers']:
        x = jax.vmap(lambda xe: _ref_block_single(xe, lp, n_heads))(x)
    eot = jnp.argmax(tokenized, axis=-1)
    x = _layer_norm(x, params['lnf_g'], params['lnf_b'])
    sel = x[jnp.arange(x.shape[0]), eot]
    return sel @ params['text_projection']


# ----------------------------------------------------------------------------
# Deterministic parameter construction (shapes follow CLIP's text tower).
# ----------------------------------------------------------------------------
def init_params(key, D, L, n_layers, n_heads, P):
    n_rand = 2 + 12 * n_layers
    keys = iter(jax.random.split(key, n_rand))

    def nrm(shape, s=0.02):
        return (jax.random.normal(next(keys), shape) * s).astype(jnp.float32)

    params = {
        'pos_emb': nrm((L, D), 0.01),
        'lnf_g': jnp.ones((1, D), jnp.float32),
        'lnf_b': jnp.zeros((1, D), jnp.float32),
        'text_projection': nrm((D, P)),
        'layers': [],
    }
    F = 4 * D
    for _ in range(n_layers):
        lp = {
            'ln1_g': jnp.ones((1, D), jnp.float32),
            'ln1_b': jnp.zeros((1, D), jnp.float32),
            'wq': nrm((D, D)), 'wk': nrm((D, D)), 'wv': nrm((D, D)),
            'bq': nrm((1, D)), 'bk': nrm((1, D)), 'bv': nrm((1, D)),
            'wo': nrm((D, D)), 'bo': nrm((1, D)),
            'ln2_g': jnp.ones((1, D), jnp.float32),
            'ln2_b': jnp.zeros((1, D), jnp.float32),
            'wfc': nrm((D, F)), 'bfc': nrm((1, F)),
            'wpj': nrm((F, D)), 'bpj': nrm((1, D)),
        }
        params['layers'].append(lp)
    return params


if __name__ == "__main__":
    B, L, D, H, N_LAYERS, P = 4, 8, 32, 4, 2, 32

    key = jax.random.PRNGKey(0)
    k_par, k_prompt, k_tok = jax.random.split(key, 3)

    params = init_params(k_par, D, L, N_LAYERS, H, P)
    kparams = prepare_kernel_params(params, H)

    prompts = (jax.random.normal(k_prompt, (B, L, D)) * 0.1).astype(jnp.float32)
    # synthetic tokenized prompts; argmax marks the "EOT" position per row
    tokenized = jax.random.randint(k_tok, (B, L), 1, 100, dtype=jnp.int32)
    eot_pos = jnp.array([5, 3, 7, 1], dtype=jnp.int32)
    tokenized = tokenized.at[jnp.arange(B), eot_pos].set(49407)

    out = text_encoder_forward(prompts, tokenized, kparams, H, block_batch=2)
    out = jax.block_until_ready(out)

    ref = jax.block_until_ready(ref_forward(prompts, tokenized, params, H))
    assert out.shape == (B, P)
    # bf16 matmuls + approximate softmax reciprocal vs an all-f32 reference.
    assert jnp.allclose(out, ref, atol=5e-2, rtol=5e-2), (
        f"max abs err {jnp.max(jnp.abs(out - ref))}")

    print("KERNEL_OK")
</pallas_src>

<mosaic_0001>
module attributes {stable_mosaic.version = 11 : i64} {
  func.func @_resblock_kernel(%arg0: i32, %arg1: memref<2x8x32xf32, #tpu.memory_space<vmem>>, %arg2: memref<1x32xf32, #tpu.memory_space<vmem>>, %arg3: memref<1x32xf32, #tpu.memory_space<vmem>>, %arg4: memref<32x96xbf16, #tpu.memory_space<vmem>>, %arg5: memref<1x96xf32, #tpu.memory_space<vmem>>, %arg6: memref<32x32xbf16, #tpu.memory_space<vmem>>, %arg7: memref<1x32xf32, #tpu.memory_space<vmem>>, %arg8: memref<1x32xf32, #tpu.memory_space<vmem>>, %arg9: memref<1x32xf32, #tpu.memory_space<vmem>>, %arg10: memref<32x128xbf16, #tpu.memory_space<vmem>>, %arg11: memref<1x128xf32, #tpu.memory_space<vmem>>, %arg12: memref<128x32xbf16, #tpu.memory_space<vmem>>, %arg13: memref<1x32xf32, #tpu.memory_space<vmem>>, %arg14: memref<2x8x32xf32, #tpu.memory_space<vmem>>) attributes {dimension_semantics = [#tpu.dimension_semantics<parallel>], iteration_bounds = array<i64: 2>, scalar_prefetch = 0 : i64, scratch_operands = 0 : i64, tpu.core_type = #tpu.core_type<tc>, window_params = [{transform_indices = @transform_0, window_bounds = array<i64: 2, 8, 32>}, {pipeline_mode = #tpu.pipeline_mode<synchronous>, transform_indices = @transform_1, window_bounds = array<i64: 1, 32>}, {pipeline_mode = #tpu.pipeline_mode<synchronous>, transform_indices = @transform_2, window_bounds = array<i64: 1, 32>}, {pipeline_mode = #tpu.pipeline_mode<synchronous>, transform_indices = @transform_3, window_bounds = array<i64: 32, 96>}, {pipeline_mode = #tpu.pipeline_mode<synchronous>, transform_indices = @transform_4, window_bounds = array<i64: 1, 96>}, {pipeline_mode = #tpu.pipeline_mode<synchronous>, transform_indices = @transform_5, window_bounds = array<i64: 32, 32>}, {pipeline_mode = #tpu.pipeline_mode<synchronous>, transform_indices = @transform_6, window_bounds = array<i64: 1, 32>}, {pipeline_mode = #tpu.pipeline_mode<synchronous>, transform_indices = @transform_7, window_bounds = array<i64: 1, 32>}, {pipeline_mode = #tpu.pipeline_mode<synchronous>, transform_indices = @transform_8, window_bounds = array<i64: 1, 32>}, {pipeline_mode = #tpu.pipeline_mode<synchronous>, transform_indices = @transform_9, window_bounds = array<i64: 32, 128>}, {pipeline_mode = #tpu.pipeline_mode<synchronous>, transform_indices = @transform_10, window_bounds = array<i64: 1, 128>}, {pipeline_mode = #tpu.pipeline_mode<synchronous>, transform_indices = @transform_11, window_bounds = array<i64: 128, 32>}, {pipeline_mode = #tpu.pipeline_mode<synchronous>, transform_indices = @transform_12, window_bounds = array<i64: 1, 32>}, {transform_indices = @transform_13, window_bounds = array<i64: 2, 8, 32>}]} {
    %c0 = arith.constant 0 : index
    %c0_0 = arith.constant 0 : index
    %c0_1 = arith.constant 0 : index
    %0 = vector.load %arg1[%c0, %c0_0, %c0_1] : memref<2x8x32xf32, #tpu.memory_space<vmem>>, vector<2x8x32xf32>
    %1 = vector.shape_cast %0 : vector<2x8x32xf32> to vector<16x32xf32>
    %c0_2 = arith.constant 0 : index
    %c0_3 = arith.constant 0 : index
    %2 = vector.load %arg2[%c0_2, %c0_3] : memref<1x32xf32, #tpu.memory_space<vmem>>, vector<1x32xf32>
    %c0_4 = arith.constant 0 : index
    %c0_5 = arith.constant 0 : index
    %3 = vector.load %arg3[%c0_4, %c0_5] : memref<1x32xf32, #tpu.memory_space<vmem>>, vector<1x32xf32>
    %cst = arith.constant dense<0.000000e+00> : vector<16xf32>
    %4 = vector.multi_reduction <add>, %1, %cst [1] : vector<16x32xf32> to vector<16xf32>
    %5 = vector.shape_cast %4 : vector<16xf32> to vector<16x1xf32>
    %cst_6 = arith.constant 3.200000e+01 : f32
    %6 = vector.broadcast %cst_6 : f32 to vector<16x1xf32>
    %7 = arith.divf %5, %6 : vector<16x1xf32>
    %8 = vector.broadcast %7 : vector<16x1xf32> to vector<16x32xf32>
    %9 = arith.subf %1, %8 : vector<16x32xf32>
    %10 = arith.mulf %9, %9 : vector<16x32xf32>
    %cst_7 = arith.constant dense<0.000000e+00> : vector<16xf32>
    %11 = vector.multi_reduction <add>, %10, %cst_7 [1] : vector<16x32xf32> to vector<16xf32>
    %12 = vector.shape_cast %11 : vector<16xf32> to vector<16x1xf32>
    %cst_8 = arith.constant 3.200000e+01 : f32
    %13 = vector.broadcast %cst_8 : f32 to vector<16x1xf32>
    %14 = arith.divf %12, %13 : vector<16x1xf32>
    %15 = vector.broadcast %7 : vector<16x1xf32> to vector<16x32xf32>
    %16 = arith.subf %1, %15 : vector<16x32xf32>
    %cst_9 = arith.constant 9.99999974E-6 : f32
    %17 = vector.broadcast %cst_9 : f32 to vector<16x1xf32>
    %18 = arith.addf %14, %17 : vector<16x1xf32>
    %19 = math.rsqrt %18 : vector<16x1xf32>
    %20 = vector.broadcast %19 : vector<16x1xf32> to vector<16x32xf32>
    %21 = arith.mulf %16, %20 : vector<16x32xf32>
    %22 = vector.broadcast %2 : vector<1x32xf32> to vector<16x32xf32>
    %23 = arith.mulf %21, %22 : vector<16x32xf32>
    %24 = vector.broadcast %3 : vector<1x32xf32> to vector<16x32xf32>
    %25 = arith.addf %23, %24 : vector<16x32xf32>
    %26 = arith.truncf %25 : vector<16x32xf32> to vector<16x32xbf16>
    %c0_10 = arith.constant 0 : index
    %c0_11 = arith.constant 0 : index
    %27 = vector.load %arg4[%c0_10, %c0_11] : memref<32x96xbf16, #tpu.memory_space<vmem>>, vector<32x96xbf16>
    %cst_12 = arith.constant dense<0.000000e+00> : vector<16x96xf32>
    %28 = tpu.matmul %26, %27, %cst_12 {dimension_numbers = #tpu.dot_dimension_numbers<[1], [0], [0], [1], [0, 0, 1, 1], [], []>} : vector<16x32xbf16>, vector<32x96xbf16>, vector<16x96xf32> -> vector<16x96xf32>
    %c0_13 = arith.constant 0 : index
    %c0_14 = arith.constant 0 : index
    %29 = vector.load %arg5[%c0_13, %c0_14] : memref<1x96xf32, #tpu.memory_space<vmem>>, vector<1x96xf32>
    %30 = vector.broadcast %29 : vector<1x96xf32> to vector<16x96xf32>
    %31 = arith.addf %28, %30 : vector<16x96xf32>
    %32 = vector.extract_strided_slice %31 {offsets = [0, 0], sizes = [16, 32], strides = [1, 1]} : vector<16x96xf32> to vector<16x32xf32>
    %33 = vector.shape_cast %32 : vector<16x32xf32> to vector<2x8x32xf32>
    %34 = arith.truncf %33 : vector<2x8x32xf32> to vector<2x8x32xbf16>
    %35 = vector.extract_strided_slice %31 {offsets = [0, 32], sizes = [16, 32], strides = [1, 1]} : vector<16x96xf32> to vector<16x32xf32>
    %36 = vector.shape_cast %35 : vector<16x32xf32> to vector<2x8x32xf32>
    %37 = arith.truncf %36 : vector<2x8x32xf32> to vector<2x8x32xbf16>
    %38 = vector.extract_strided_slice %31 {offsets = [0, 64], sizes = [16, 32], strides = [1, 1]} : vector<16x96xf32> to vector<16x32xf32>
    %39 = vector.shape_cast %38 : vector<16x32xf32> to vector<2x8x32xf32>
    %40 = arith.truncf %39 : vector<2x8x32xf32> to vector<2x8x32xbf16>
    %41 = tpu.iota {dimensions = array<i32: 0>} : vector<8x8xi32>
    %42 = tpu.iota {dimensions = array<i32: 1>} : vector<8x8xi32>
    %43 = arith.cmpi sle, %42, %41 : vector<8x8xi32>
    %cst_15 = arith.constant 0.000000e+00 : f32
    %cst_16 = arith.constant -1.000000e+09 : f32
    %44 = vector.broadcast %cst_15 : f32 to vector<8x8xf32>
    %45 = vector.broadcast %cst_16 : f32 to vector<8x8xf32>
    %46 = arith.select %43, %44, %45 : vector<8x8xi1>, vector<8x8xf32>
    %47 = vector.shape_cast %46 : vector<8x8xf32> to vector<1x8x8xf32>
    %cst_17 = arith.constant 0.000000e+00 : f32
    %48 = vector.broadcast %cst_17 : f32 to vector<16x32xf32>
    %49 = vector.extract_strided_slice %34 {offsets = [0, 0, 0], sizes = [2, 8, 8], strides = [1, 1, 1]} : vector<2x8x32xbf16> to vector<2x8x8xbf16>
    %50 = vector.extract_strided_slice %37 {offsets = [0, 0, 0], sizes = [2, 8, 8], strides = [1, 1, 1]} : vector<2x8x32xbf16> to vector<2x8x8xbf16>
    %51 = vector.extract_strided_slice %40 {offsets = [0, 0, 0], sizes = [2, 8, 8], strides = [1, 1, 1]} : vector<2x8x32xbf16> to vector<2x8x8xbf16>
    "tpu.trace_start"() <{level = 10 : i32, message = "bld,bmd->blm"}> : () -> ()
    %cst_18 = arith.constant dense<0.000000e+00> : vector<2x8x8xf32>
    %52 = tpu.matmul %49, %50, %cst_18 {dimension_numbers = #tpu.dot_dimension_numbers<[2], [2], [1], [1], [0, 0, 0, 1, 1, 1], [0], [0]>} : vector<2x8x8xbf16>, vector<2x8x8xbf16>, vector<2x8x8xf32> -> vector<2x8x8xf32>
    "tpu.trace_stop"() : () -> ()
    %53 = vector.broadcast %47 : vector<1x8x8xf32> to vector<2x8x8xf32>
    %54 = arith.addf %52, %53 : vector<2x8x8xf32>
    %cst_19 = arith.constant dense<0xFF800000> : vector<2x8xf32>
    %55 = vector.multi_reduction <maximumf>, %54, %cst_19 [2] : vector<2x8x8xf32> to vector<2x8xf32>
    %56 = vector.shape_cast %55 : vector<2x8xf32> to vector<2x8x1xf32>
    %57 = vector.broadcast %56 : vector<2x8x1xf32> to vector<2x8x8xf32>
    %58 = arith.subf %54, %57 : vector<2x8x8xf32>
    %59 = math.exp %58 : vector<2x8x8xf32>
    %cst_20 = arith.constant dense<0.000000e+00> : vector<2x8xf32>
    %60 = vector.multi_reduction <add>, %59, %cst_20 [2] : vector<2x8x8xf32> to vector<2x8xf32>
    %61 = vector.shape_cast %60 : vector<2x8xf32> to vector<2x8x1xf32>
    %62 = tpu.reciprocal %61 {approx = true} : vector<2x8x1xf32> -> vector<2x8x1xf32>
    %63 = vector.broadcast %62 : vector<2x8x1xf32> to vector<2x8x8xf32>
    %64 = arith.mulf %59, %63 : vector<2x8x8xf32>
    %65 = arith.truncf %64 : vector<2x8x8xf32> to vector<2x8x8xbf16>
    "tpu.trace_start"() <{level = 10 : i32, message = "blm,bmd->bld"}> : () -> ()
    %cst_21 = arith.constant dense<0.000000e+00> : vector<2x8x8xf32>
    %66 = tpu.matmul %65, %51, %cst_21 {dimension_numbers = #tpu.dot_dimension_numbers<[2], [1], [1], [2], [0, 0, 0, 1, 1, 2], [0], [0]>} : vector<2x8x8xbf16>, vector<2x8x8xbf16>, vector<2x8x8xf32> -> vector<2x8x8xf32>
    "tpu.trace_stop"() : () -> ()
    %67 = vector.shape_cast %66 : vector<2x8x8xf32> to vector<16x8xf32>
    %68 = arith.truncf %67 : vector<16x8xf32> to vector<16x8xbf16>
    %c0_22 = arith.constant 0 : index
    %c0_23 = arith.constant 0 : index
    %69 = vector.load %arg6[%c0_22, %c0_23] : memref<32x32xbf16, #tpu.memory_space<vmem>>, vector<8x32xbf16>
    %cst_24 = arith.constant dense<0.000000e+00> : vector<16x32xf32>
    %70 = tpu.matmul %68, %69, %cst_24 {dimension_numbers = #tpu.dot_dimension_numbers<[1], [0], [0], [1], [0, 0, 1, 1], [], []>} : vector<16x8xbf16>, vector<8x32xbf16>, vector<16x32xf32> -> vector<16x32xf32>
    %71 = arith.addf %48, %70 : vector<16x32xf32>
    %72 = vector.extract_strided_slice %34 {offsets = [0, 0, 8], sizes = [2, 8, 8], strides = [1, 1, 1]} : vector<2x8x32xbf16> to vector<2x8x8xbf16>
    %73 = vector.extract_strided_slice %37 {offsets = [0, 0, 8], sizes = [2, 8, 8], strides = [1, 1, 1]} : vector<2x8x32xbf16> to vector<2x8x8xbf16>
    %74 = vector.extract_strided_slice %40 {offsets = [0, 0, 8], sizes = [2, 8, 8], strides = [1, 1, 1]} : vector<2x8x32xbf16> to vector<2x8x8xbf16>
    "tpu.trace_start"() <{level = 10 : i32, message = "bld,bmd->blm"}> : () -> ()
    %cst_25 = arith.constant dense<0.000000e+00> : vector<2x8x8xf32>
    %75 = tpu.matmul %72, %73, %cst_25 {dimension_numbers = #tpu.dot_dimension_numbers<[2], [2], [1], [1], [0, 0, 0, 1, 1, 1], [0], [0]>} : vector<2x8x8xbf16>, vector<2x8x8xbf16>, vector<2x8x8xf32> -> vector<2x8x8xf32>
    "tpu.trace_stop"() : () -> ()
    %76 = vector.broadcast %47 : vector<1x8x8xf32> to vector<2x8x8xf32>
    %77 = arith.addf %75, %76 : vector<2x8x8xf32>
    %cst_26 = arith.constant dense<0xFF800000> : vector<2x8xf32>
    %78 = vector.multi_reduction <maximumf>, %77, %cst_26 [2] : vector<2x8x8xf32> to vector<2x8xf32>
    %79 = vector.shape_cast %78 : vector<2x8xf32> to vector<2x8x1xf32>
    %80 = vector.broadcast %79 : vector<2x8x1xf32> to vector<2x8x8xf32>
    %81 = arith.subf %77, %80 : vector<2x8x8xf32>
    %82 = math.exp %81 : vector<2x8x8xf32>
    %cst_27 = arith.constant dense<0.000000e+00> : vector<2x8xf32>
    %83 = vector.multi_reduction <add>, %82, %cst_27 [2] : vector<2x8x8xf32> to vector<2x8xf32>
    %84 = vector.shape_cast %83 : vector<2x8xf32> to vector<2x8x1xf32>
    %85 = tpu.reciprocal %84 {approx = true} : vector<2x8x1xf32> -> vector<2x8x1xf32>
    %86 = vector.broadcast %85 : vector<2x8x1xf32> to vector<2x8x8xf32>
    %87 = arith.mulf %82, %86 : vector<2x8x8xf32>
    %88 = arith.truncf %87 : vector<2x8x8xf32> to vector<2x8x8xbf16>
    "tpu.trace_start"() <{level = 10 : i32, message = "blm,bmd->bld"}> : () -> ()
    %cst_28 = arith.constant dense<0.000000e+00> : vector<2x8x8xf32>
    %89 = tpu.matmul %88, %74, %cst_28 {dimension_numbers = #tpu.dot_dimension_numbers<[2], [1], [1], [2], [0, 0, 0, 1, 1, 2], [0], [0]>} : vector<2x8x8xbf16>, vector<2x8x8xbf16>, vector<2x8x8xf32> -> vector<2x8x8xf32>
    "tpu.trace_stop"() : () -> ()
    %90 = vector.shape_cast %89 : vector<2x8x8xf32> to vector<16x8xf32>
    %91 = arith.truncf %90 : vector<16x8xf32> to vector<16x8xbf16>
    %c8 = arith.constant 8 : index
    %c0_29 = arith.constant 0 : index
    %92 = vector.load %arg6[%c8, %c0_29] : memref<32x32xbf16, #tpu.memory_space<vmem>>, vector<8x32xbf16>
    %cst_30 = arith.constant dense<0.000000e+00> : vector<16x32xf32>
    %93 = tpu.matmul %91, %92, %cst_30 {dimension_numbers = #tpu.dot_dimension_numbers<[1], [0], [0], [1], [0, 0, 1, 1], [], []>} : vector<16x8xbf16>, vector<8x32xbf16>, vector<16x32xf32> -> vector<16x32xf32>
    %94 = arith.addf %71, %93 : vector<16x32xf32>
    %95 = vector.extract_strided_slice %34 {offsets = [0, 0, 16], sizes = [2, 8, 8], strides = [1, 1, 1]} : vector<2x8x32xbf16> to vector<2x8x8xbf16>
    %96 = vector.extract_strided_slice %37 {offsets = [0, 0, 16], sizes = [2, 8, 8], strides = [1, 1, 1]} : vector<2x8x32xbf16> to vector<2x8x8xbf16>
    %97 = vector.extract_strided_slice %40 {offsets = [0, 0, 16], sizes = [2, 8, 8], strides = [1, 1, 1]} : vector<2x8x32xbf16> to vector<2x8x8xbf16>
    "tpu.trace_start"() <{level = 10 : i32, message = "bld,bmd->blm"}> : () -> ()
    %cst_31 = arith.constant dense<0.000000e+00> : vector<2x8x8xf32>
    %98 = tpu.matmul %95, %96, %cst_31 {dimension_numbers = #tpu.dot_dimension_numbers<[2], [2], [1], [1], [0, 0, 0, 1, 1, 1], [0], [0]>} : vector<2x8x8xbf16>, vector<2x8x8xbf16>, vector<2x8x8xf32> -> vector<2x8x8xf32>
    "tpu.trace_stop"() : () -> ()
    %99 = vector.broadcast %47 : vector<1x8x8xf32> to vector<2x8x8xf32>
    %100 = arith.addf %98, %99 : vector<2x8x8xf32>
    %cst_32 = arith.constant dense<0xFF800000> : vector<2x8xf32>
    %101 = vector.multi_reduction <maximumf>, %100, %cst_32 [2] : vector<2x8x8xf32> to vector<2x8xf32>
    %102 = vector.shape_cast %101 : vector<2x8xf32> to vector<2x8x1xf32>
    %103 = vector.broadcast %102 : vector<2x8x1xf32> to vector<2x8x8xf32>
    %104 = arith.subf %100, %103 : vector<2x8x8xf32>
    %105 = math.exp %104 : vector<2x8x8xf32>
    %cst_33 = arith.constant dense<0.000000e+00> : vector<2x8xf32>
    %106 = vector.multi_reduction <add>, %105, %cst_33 [2] : vector<2x8x8xf32> to vector<2x8xf32>
    %107 = vector.shape_cast %106 : vector<2x8xf32> to vector<2x8x1xf32>
    %108 = tpu.reciprocal %107 {approx = true} : vector<2x8x1xf32> -> vector<2x8x1xf32>
    %109 = vector.broadcast %108 : vector<2x8x1xf32> to vector<2x8x8xf32>
    %110 = arith.mulf %105, %109 : vector<2x8x8xf32>
    %111 = arith.truncf %110 : vector<2x8x8xf32> to vector<2x8x8xbf16>
    "tpu.trace_start"() <{level = 10 : i32, message = "blm,bmd->bld"}> : () -> ()
    %cst_34 = arith.constant dense<0.000000e+00> : vector<2x8x8xf32>
    %112 = tpu.matmul %111, %97, %cst_34 {dimension_numbers = #tpu.dot_dimension_numbers<[2], [1], [1], [2], [0, 0, 0, 1, 1, 2], [0], [0]>} : vector<2x8x8xbf16>, vector<2x8x8xbf16>, vector<2x8x8xf32> -> vector<2x8x8xf32>
    "tpu.trace_stop"() : () -> ()
    %113 = vector.shape_cast %112 : vector<2x8x8xf32> to vector<16x8xf32>
    %114 = arith.truncf %113 : vector<16x8xf32> to vector<16x8xbf16>
    %c16 = arith.constant 16 : index
    %c0_35 = arith.constant 0 : index
    %115 = vector.load %arg6[%c16, %c0_35] : memref<32x32xbf16, #tpu.memory_space<vmem>>, vector<8x32xbf16>
    %cst_36 = arith.constant dense<0.000000e+00> : vector<16x32xf32>
    %116 = tpu.matmul %114, %115, %cst_36 {dimension_numbers = #tpu.dot_dimension_numbers<[1], [0], [0], [1], [0, 0, 1, 1], [], []>} : vector<16x8xbf16>, vector<8x32xbf16>, vector<16x32xf32> -> vector<16x32xf32>
    %117 = arith.addf %94, %116 : vector<16x32xf32>
    %118 = vector.extract_strided_slice %34 {offsets = [0, 0, 24], sizes = [2, 8, 8], strides = [1, 1, 1]} : vector<2x8x32xbf16> to vector<2x8x8xbf16>
    %119 = vector.extract_strided_slice %37 {offsets = [0, 0, 24], sizes = [2, 8, 8], strides = [1, 1, 1]} : vector<2x8x32xbf16> to vector<2x8x8xbf16>
    %120 = vector.extract_strided_slice %40 {offsets = [0, 0, 24], sizes = [2, 8, 8], strides = [1, 1, 1]} : vector<2x8x32xbf16> to vector<2x8x8xbf16>
    "tpu.trace_start"() <{level = 10 : i32, message = "bld,bmd->blm"}> : () -> ()
    %cst_37 = arith.constant dense<0.000000e+00> : vector<2x8x8xf32>
    %121 = tpu.matmul %118, %119, %cst_37 {dimension_numbers = #tpu.dot_dimension_numbers<[2], [2], [1], [1], [0, 0, 0, 1, 1, 1], [0], [0]>} : vector<2x8x8xbf16>, vector<2x8x8xbf16>, vector<2x8x8xf32> -> vector<2x8x8xf32>
    "tpu.trace_stop"() : () -> ()
    %122 = vector.broadcast %47 : vector<1x8x8xf32> to vector<2x8x8xf32>
    %123 = arith.addf %121, %122 : vector<2x8x8xf32>
    %cst_38 = arith.constant dense<0xFF800000> : vector<2x8xf32>
    %124 = vector.multi_reduction <maximumf>, %123, %cst_38 [2] : vector<2x8x8xf32> to vector<2x8xf32>
    %125 = vector.shape_cast %124 : vector<2x8xf32> to vector<2x8x1xf32>
    %126 = vector.broadcast %125 : vector<2x8x1xf32> to vector<2x8x8xf32>
    %127 = arith.subf %123, %126 : vector<2x8x8xf32>
    %128 = math.exp %127 : vector<2x8x8xf32>
    %cst_39 = arith.constant dense<0.000000e+00> : vector<2x8xf32>
    %129 = vector.multi_reduction <add>, %128, %cst_39 [2] : vector<2x8x8xf32> to vector<2x8xf32>
    %130 = vector.shape_cast %129 : vector<2x8xf32> to vector<2x8x1xf32>
    %131 = tpu.reciprocal %130 {approx = true} : vector<2x8x1xf32> -> vector<2x8x1xf32>
    %132 = vector.broadcast %131 : vector<2x8x1xf32> to vector<2x8x8xf32>
    %133 = arith.mulf %128, %132 : vector<2x8x8xf32>
    %134 = arith.truncf %133 : vector<2x8x8xf32> to vector<2x8x8xbf16>
    "tpu.trace_start"() <{level = 10 : i32, message = "blm,bmd->bld"}> : () -> ()
    %cst_40 = arith.constant dense<0.000000e+00> : vector<2x8x8xf32>
    %135 = tpu.matmul %134, %120, %cst_40 {dimension_numbers = #tpu.dot_dimension_numbers<[2], [1], [1], [2], [0, 0, 0, 1, 1, 2], [0], [0]>} : vector<2x8x8xbf16>, vector<2x8x8xbf16>, vector<2x8x8xf32> -> vector<2x8x8xf32>
    "tpu.trace_stop"() : () -> ()
    %136 = vector.shape_cast %135 : vector<2x8x8xf32> to vector<16x8xf32>
    %137 = arith.truncf %136 : vector<16x8xf32> to vector<16x8xbf16>
    %c24 = arith.constant 24 : index
    %c0_41 = arith.constant 0 : index
    %138 = vector.load %arg6[%c24, %c0_41] : memref<32x32xbf16, #tpu.memory_space<vmem>>, vector<8x32xbf16>
    %cst_42 = arith.constant dense<0.000000e+00> : vector<16x32xf32>
    %139 = tpu.matmul %137, %138, %cst_42 {dimension_numbers = #tpu.dot_dimension_numbers<[1], [0], [0], [1], [0, 0, 1, 1], [], []>} : vector<16x8xbf16>, vector<8x32xbf16>, vector<16x32xf32> -> vector<16x32xf32>
    %140 = arith.addf %117, %139 : vector<16x32xf32>
    %141 = arith.addf %1, %140 : vector<16x32xf32>
    %c0_43 = arith.constant 0 : index
    %c0_44 = arith.constant 0 : index
    %142 = vector.load %arg7[%c0_43, %c0_44] : memref<1x32xf32, #tpu.memory_space<vmem>>, vector<1x32xf32>
    %143 = vector.broadcast %142 : vector<1x32xf32> to vector<16x32xf32>
    %144 = arith.addf %141, %143 : vector<16x32xf32>
    %c0_45 = arith.constant 0 : index
    %c0_46 = arith.constant 0 : index
    %145 = vector.load %arg8[%c0_45, %c0_46] : memref<1x32xf32, #tpu.memory_space<vmem>>, vector<1x32xf32>
    %c0_47 = arith.constant 0 : index
    %c0_48 = arith.constant 0 : index
    %146 = vector.load %arg9[%c0_47, %c0_48] : memref<1x32xf32, #tpu.memory_space<vmem>>, vector<1x32xf32>
    %cst_49 = arith.constant dense<0.000000e+00> : vector<16xf32>
    %147 = vector.multi_reduction <add>, %144, %cst_49 [1] : vector<16x32xf32> to vector<16xf32>
    %148 = vector.shape_cast %147 : vector<16xf32> to vector<16x1xf32>
    %cst_50 = arith.constant 3.200000e+01 : f32
    %149 = vector.broadcast %cst_50 : f32 to vector<16x1xf32>
    %150 = arith.divf %148, %149 : vector<16x1xf32>
    %151 = vector.broadcast %150 : vector<16x1xf32> to vector<16x32xf32>
    %152 = arith.subf %144, %151 : vector<16x32xf32>
    %153 = arith.mulf %152, %152 : vector<16x32xf32>
    %cst_51 = arith.constant dense<0.000000e+00> : vector<16xf32>
    %154 = vector.multi_reduction <add>, %153, %cst_51 [1] : vector<16x32xf32> to vector<16xf32>
    %155 = vector.shape_cast %154 : vector<16xf32> to vector<16x1xf32>
    %cst_52 = arith.constant 3.200000e+01 : f32
    %156 = vector.broadcast %cst_52 : f32 to vector<16x1xf32>
    %157 = arith.divf %155, %156 : vector<16x1xf32>
    %158 = vector.broadcast %150 : vector<16x1xf32> to vector<16x32xf32>
    %159 = arith.subf %144, %158 : vector<16x32xf32>
    %cst_53 = arith.constant 9.99999974E-6 : f32
    %160 = vector.broadcast %cst_53 : f32 to vector<16x1xf32>
    %161 = arith.addf %157, %160 : vector<16x1xf32>
    %162 = math.rsqrt %161 : vector<16x1xf32>
    %163 = vector.broadcast %162 : vector<16x1xf32> to vector<16x32xf32>
    %164 = arith.mulf %159, %163 : vector<16x32xf32>
    %165 = vector.broadcast %145 : vector<1x32xf32> to vector<16x32xf32>
    %166 = arith.mulf %164, %165 : vector<16x32xf32>
    %167 = vector.broadcast %146 : vector<1x32xf32> to vector<16x32xf32>
    %168 = arith.addf %166, %167 : vector<16x32xf32>
    %169 = arith.truncf %168 : vector<16x32xf32> to vector<16x32xbf16>
    %c0_54 = arith.constant 0 : index
    %c0_55 = arith.constant 0 : index
    %170 = vector.load %arg10[%c0_54, %c0_55] : memref<32x128xbf16, #tpu.memory_space<vmem>>, vector<32x128xbf16>
    %cst_56 = arith.constant dense<0.000000e+00> : vector<16x128xf32>
    %171 = tpu.matmul %169, %170, %cst_56 {dimension_numbers = #tpu.dot_dimension_numbers<[1], [0], [0], [1], [0, 0, 1, 1], [], []>} : vector<16x32xbf16>, vector<32x128xbf16>, vector<16x128xf32> -> vector<16x128xf32>
    %c0_57 = arith.constant 0 : index
    %c0_58 = arith.constant 0 : index
    %172 = vector.load %arg11[%c0_57, %c0_58] : memref<1x128xf32, #tpu.memory_space<vmem>>, vector<1x128xf32>
    %173 = vector.broadcast %172 : vector<1x128xf32> to vector<16x128xf32>
    %174 = arith.addf %171, %173 : vector<16x128xf32>
    %cst_59 = arith.constant 1.702000e+00 : f32
    %175 = vector.broadcast %cst_59 : f32 to vector<16x128xf32>
    %176 = arith.mulf %175, %174 : vector<16x128xf32>
    %177 = arith.negf %176 : vector<16x128xf32>
    %178 = math.exp %177 : vector<16x128xf32>
    %cst_60 = arith.constant 1.000000e+00 : f32
    %179 = vector.broadcast %cst_60 : f32 to vector<16x128xf32>
    %180 = arith.addf %179, %178 : vector<16x128xf32>
    %181 = arith.divf %179, %180 : vector<16x128xf32>
    %182 = arith.mulf %174, %181 : vector<16x128xf32>
    %183 = arith.truncf %182 : vector<16x128xf32> to vector<16x128xbf16>
    %c0_61 = arith.constant 0 : index
    %c0_62 = arith.constant 0 : index
    %184 = vector.load %arg12[%c0_61, %c0_62] : memref<128x32xbf16, #tpu.memory_space<vmem>>, vector<128x32xbf16>
    %cst_63 = arith.constant dense<0.000000e+00> : vector<16x32xf32>
    %185 = tpu.matmul %183, %184, %cst_63 {dimension_numbers = #tpu.dot_dimension_numbers<[1], [0], [0], [1], [0, 0, 1, 1], [], []>} : vector<16x128xbf16>, vector<128x32xbf16>, vector<16x32xf32> -> vector<16x32xf32>
    %c0_64 = arith.constant 0 : index
    %c0_65 = arith.constant 0 : index
    %186 = vector.load %arg13[%c0_64, %c0_65] : memref<1x32xf32, #tpu.memory_space<vmem>>, vector<1x32xf32>
    %187 = vector.broadcast %186 : vector<1x32xf32> to vector<16x32xf32>
    %188 = arith.addf %185, %187 : vector<16x32xf32>
    %189 = arith.addf %144, %188 : vector<16x32xf32>
    %190 = vector.shape_cast %189 : vector<16x32xf32> to vector<2x8x32xf32>
    %c0_66 = arith.constant 0 : index
    %c0_67 = arith.constant 0 : index
    %c0_68 = arith.constant 0 : index
    %191 = vector.load %arg14[%c0_66, %c0_67, %c0_68] : memref<2x8x32xf32, #tpu.memory_space<vmem>>, vector<2x8x32xf32>
    tpu.vector_store %arg14[%c0_66, %c0_67, %c0_68], %190 {strides = array<i32>} : memref<2x8x32xf32, #tpu.memory_space<vmem>>, vector<2x8x32xf32>,
    return
  }
  func.func @transform_0(%arg0: i32) -> (i32, i32, i32) {
    %c0_i32 = arith.constant 0 : i32
    %c0_i32_0 = arith.constant 0 : i32
    %c0_i32_1 = arith.constant 0 : i32
    return %arg0, %c0_i32, %c0_i32_0 : i32, i32, i32
  }
  func.func @transform_1(%arg0: i32) -> (i32, i32) {
    %c0_i32 = arith.constant 0 : i32
    %c0_i32_0 = arith.constant 0 : i32
    %c0_i32_1 = arith.constant 0 : i32
    return %c0_i32, %c0_i32_0 : i32, i32
  }
  func.func @transform_2(%arg0: i32) -> (i32, i32) {
    %c0_i32 = arith.constant 0 : i32
    %c0_i32_0 = arith.constant 0 : i32
    %c0_i32_1 = arith.constant 0 : i32
    return %c0_i32, %c0_i32_0 : i32, i32
  }
  func.func @transform_3(%arg0: i32) -> (i32, i32) {
    %c0_i32 = arith.constant 0 : i32
    %c0_i32_0 = arith.constant 0 : i32
    %c0_i32_1 = arith.constant 0 : i32
    return %c0_i32, %c0_i32_0 : i32, i32
  }
  func.func @transform_4(%arg0: i32) -> (i32, i32) {
    %c0_i32 = arith.constant 0 : i32
    %c0_i32_0 = arith.constant 0 : i32
    %c0_i32_1 = arith.constant 0 : i32
    return %c0_i32, %c0_i32_0 : i32, i32
  }
  func.func @transform_5(%arg0: i32) -> (i32, i32) {
    %c0_i32 = arith.constant 0 : i32
    %c0_i32_0 = arith.constant 0 : i32
    %c0_i32_1 = arith.constant 0 : i32
    return %c0_i32, %c0_i32_0 : i32, i32
  }
  func.func @transform_6(%arg0: i32) -> (i32, i32) {
    %c0_i32 = arith.constant 0 : i32
    %c0_i32_0 = arith.constant 0 : i32
    %c0_i32_1 = arith.constant 0 : i32
    return %c0_i32, %c0_i32_0 : i32, i32
  }
  func.func @transform_7(%arg0: i32) -> (i32, i32) {
    %c0_i32 = arith.constant 0 : i32
    %c0_i32_0 = arith.constant 0 : i32
    %c0_i32_1 = arith.constant 0 : i32
    return %c0_i32, %c0_i32_0 : i32, i32
  }
  func.func @transform_8(%arg0: i32) -> (i32, i32) {
    %c0_i32 = arith.constant 0 : i32
    %c0_i32_0 = arith.constant 0 : i32
    %c0_i32_1 = arith.constant 0 : i32
    return %c0_i32, %c0_i32_0 : i32, i32
  }
  func.func @transform_9(%arg0: i32) -> (i32, i32) {
    %c0_i32 = arith.constant 0 : i32
    %c0_i32_0 = arith.constant 0 : i32
    %c0_i32_1 = arith.constant 0 : i32
    return %c0_i32, %c0_i32_0 : i32, i32
  }
  func.func @transform_10(%arg0: i32) -> (i32, i32) {
    %c0_i32 = arith.constant 0 : i32
    %c0_i32_0 = arith.constant 0 : i32
    %c0_i32_1 = arith.constant 0 : i32
    return %c0_i32, %c0_i32_0 : i32, i32
  }
  func.func @transform_11(%arg0: i32) -> (i32, i32) {
    %c0_i32 = arith.constant 0 : i32
    %c0_i32_0 = arith.constant 0 : i32
    %c0_i32_1 = arith.constant 0 : i32
    return %c0_i32, %c0_i32_0 : i32, i32
  }
  func.func @transform_12(%arg0: i32) -> (i32, i32) {
    %c0_i32 = arith.constant 0 : i32
    %c0_i32_0 = arith.constant 0 : i32
    %c0_i32_1 = arith.constant 0 : i32
    return %c0_i32, %c0_i32_0 : i32, i32
  }
  func.func @transform_13(%arg0: i32) -> (i32, i32, i32) {
    %c0_i32 = arith.constant 0 : i32
    %c0_i32_0 = arith.constant 0 : i32
    %c0_i32_1 = arith.constant 0 : i32
    return %arg0, %c0_i32, %c0_i32_0 : i32, i32, i32
  }
}

</mosaic_0001>

<bundles_post_ra>
// kernel: tpu_custom_call.1
= control target key start
LH: loop header
LB: loop body
LE: loop exit
PB: predicated region body
PF: predicated region fallthrough
CT: control target
= control target key end

     0   :  { %s2144_s0 = inlined_call_operand.vmem [shape: f32[4,8,32], index: 0, kind: input, shape index: {}]   ;;  %s2145_s1 = inlined_call_operand.hbm [shape: f32[1,32], index: 1, kind: input, shape index: {}]   ;;  %s2146_s2 = inlined_call_operand.vmem [shape: f32[1,32], index: 2, kind: input, shape index: {}]   ;;  %s2147_s3 = inlined_call_operand.vmem [shape: bf16[32,96], index: 3, kind: input, shape index: {}]   ;;  %s2148_s4 = inlined_call_operand.vmem [shape: f32[1,96], index: 4, kind: input, shape index: {}]   ;;  %s2149_s5 = inlined_call_operand.vmem [shape: bf16[32,32], index: 5, kind: input, shape index: {}]   ;;  %s2150_s6 = inlined_call_operand.vmem [shape: f32[1,32], index: 6, kind: input, shape index: {}]   ;;  %s2151_s7 = inlined_call_operand.vmem [shape: f32[1,32], index: 7, kind: input, shape index: {}]   ;;  %s2152_s8 = inlined_call_operand.vmem [shape: f32[1,32], index: 8, kind: input, shape index: {}]   ;;  %s2153_s9 = inlined_call_operand.vmem [shape: bf16[32,128], index: 9, kind: input, shape index: {}]   ;;  %s2154_s10 = inlined_call_operand.vmem [shape: f32[1,128], index: 10, kind: input, shape index: {}]   ;;  %s2155_s11 = inlined_call_operand.vmem [shape: bf16[128,32], index: 11, kind: input, shape index: {}]   ;;  %s2156_s12 = inlined_call_operand.vmem [shape: f32[1,32], index: 12, kind: input, shape index: {}]   ;;  %s2157_s13 = inlined_call_operand.hbm [shape: f32[4,8,32], index: 13, kind: output, shape index: {}]  }
   0x1   :  { %2158 = sst [smem:[#allocation9_spill]] %s2144_s0 }
   0x2   :  { %2159 = sst [smem:[#allocation10_spill]] %s2145_s1 }
   0x3   :  { %18 = vsyncpa [#allocation3], 0 }
   0x4   :  { %19 = vsyncpa [#allocation4], 0 }
   0x5   :  { %21 = vsyncpa [#allocation4 + $0x1], 0  ;;  %s1841_s25 = smov 0   ;;  %s1843_s26 = smov 0  }
   0x6   :  { %s1845_s27 = smov 0   ;;  %s1847_s28 = smov 0  }
   0x7 LB: > { %s1862_s29 = sadd.s32 4294967295, %s1753_s28   ;;  %s1435_s30 = sadd.s32 4294967294, %s1753_s28   ;;  %s1753_s28 = sphi %s1847_s28, %s2169_s28   ;;  %s1749_s27 = sphi %s1845_s27, %s2168_s27   ;;  %s1745_s26 = sphi %s1843_s26, %s2167_s26   ;;  %s1741_s25 = sphi %s1841_s25, %s2166_s25  }
   0x8   : > { %s1866_s14 = sadd.s32 1, %s1753_s28   ;;  %s312_s15 = sadd.s32 1, %s1749_s27 }
   0x9   : > { %s309_s16 = ssub.s32 %s1753_s28, %s1866_s14  ;;  %p322_p0 = scmp.ne.s32.totalorder %s1749_s27, %s1745_s26 }
   0xa   : > { %p310_p1 = scmp.eq.s32.totalorder %s309_s16, 0  ;;  %p323_p2 = scmp.eq.s32.totalorder %s1862_s29, 1 }
   0xb   : > { %p328_p3 = scmp.ne.s32.totalorder %s1745_s26, %s1741_s25  ;;  %p329_p4 = scmp.eq.s32.totalorder %s1435_s30, 1 }
   0xc   : > { %s1877_s17 = scalar_select %p310_p1, %s1749_s27, %s312_s15  }
   0xd   : > { %p1879_p5 = por %p323_p2, %p322_p0  ;;  %p1883_p6 = por %p329_p4, %p328_p3 }
   0xe   : > { %2160 = sst [smem:[#allocation8_spill]] %s1877_s17  ;;  %p1436_p7 = scmp.ge.s32.totalorder %s1753_s28, 1 }
   0xf   : > { %p336_p8 = scmp.lt.s32.totalorder %s1753_s28, 3  ;;  %p1548_p9 = scmp.eq.s32.totalorder %s1862_s29, 0 }
  0x10   : > { %s2163_s1 = sld [smem:[#allocation10_spill]]  ;;  %s1755_s23 = smov [#allocation2]  }
  0x11   : > { %p337_p10 = pnand %p1436_p7, %p336_p8  ;;  %s350_s24 = sshll.u32 %s1755_s23, 4  ;;  %s351_s24 = int_to_ptr.vmem [resolvable:$true] %s350_s24 }
  0x13   : > { %p1540_p11 = pneg %p337_p10  ;;  %405 = sbr.rel (%p337_p10) target bundleno = 2613 (0xa35), region = 72 }
  0x15   : > { %p1541_p12 = pnand %p1548_p9, %p1540_p11 }
  0x16   : > { %s348_s22 = sshll.u32 %s2163_s1, 4  ;;  %s349_s22 = int_to_ptr.hbm [resolvable:$true] %s348_s22 }
  0x17   : > { %1543 = dma.hbm_to_vmem [thread:$0]  (!%p1541_p12), %s349_s22, 16, %s351_s24, [#allocation3]  }
  0x18   : > { %1732 = dma.done.wait (%p1548_p9), [#allocation3], 16  }
  0x19   : > { %1734 = vsyncadd (%p1548_p9), [#allocation3], 4294967280  ;;  %s1442_s30 = sshll.u32 %s1862_s29, 1  ;;  %vm462_vm0 = vcmask 261120   ;;  %s2164_s0 = sld [smem:[#allocation9_spill]]  ;;  %v1756_v4 = vmov 32.0  }
  0x1a   : > { %p451_p13 = scmp.lt.s32.totalorder %s1442_s30, 3  ;;  %1607 = vrcp.f32 %v1756_v4  ;;  %v1522_v21 = vld [vmem:[%s2147_s3 + $0x8] sm:$0xff]  ;;  %v1521_v23 = vld [vmem:[%s2147_s3] sm:$0xff]  ;;  %s1758_s17 = smov 88   ;;  %vm575_vm8 = vcmask 64512   ;;  %vm648_vm9 = vcmask 1043456  }
  0x1b   : > { %554 = vmatpush.bf16.msra.mxu0 %v1522_v21  ;;  %v1599_v42 = vld [vmem:[#allocation2] ss:$0 sm:$0xff]  ;;  %s1759_s21 = smov 120   ;;  %s1760_s22 = smov 56  }
  0x1c   : > { %s2171_s30 = smov (!%p451_p13, %s1442_s30), 3  ;;  %v1600_v47 = vld [vmem:[%s2146_s2] ss:$0 sm:$0xff]  ;;  %s1762_s23 = smov 80  }
  0x1d   : > { %s1443_s15 = sshll.u32 %s2171_s30, 3  ;;  %v1601_v52 = vld [vmem:[%s2148_s4] ss:$0 sm:$0xff]  ;;  %s1763_s24 = smov 64  }
  0x1e   : > { %s1764_s30 = smov 112   ;;  %s1766_s16 = smov 72  }
  0x1f   : > { %s454_s20 = scalar_lea.vmem %s2164_s0, %s1443_s15  ;;  %555 = vmatpush.bf16.msra.mxu0 %v1521_v23  ;;  %s1765_s15 = smov 48  }
  0x20   : > { %v1897_v0 = vld [vmem:[%s454_s20] sm:$0xff]  ;;  %v1901_v2 = vld [vmem:[%s454_s20 + $0x8] sm:$0xff]  ;;  %v1608_v5 = vpop.eup %1607  ;;  %s1757_s20 = smov 96  }
  0x21   : > { %v463_v1 = vsel %vm462_vm0, %v1897_v0, 0.0  ;;  %v466_v3 = vsel %vm462_vm0, %v1901_v2, 0.0  ;;  %v470_v6 = vmul.f32 32.0, %v1608_v5  ;;  %vm474_vm1 = vweird.f32 %v1608_v5 }
  0x22   : > { %464 = vadd.xlane.f32.xlu0 %v463_v1 }
  0x23   : > { %v471_v7 = vsub.f32 1.0, %v470_v6 }
  0x25   : > { %v472_v8 = vmul.f32 %v1608_v5, %v471_v7 }
  0x27   : > { %v473_v9 = vadd.f32 %v1608_v5, %v472_v8 }
  0x29   : > { %v1905_v10 = vsel %vm474_vm1, %v1608_v5, %v473_v9 }
  0x2a   : > { %467 = vadd.xlane.f32.xlu0 %v466_v3 }
  0x95   : > { %v465_v11 = vpop.xlane.xlu0 %464 }
  0x96   : > { %v476_v12 = vmul.f32 %v1905_v10, %v465_v11 }
  0x98   : > { %v478_v13 = vsub.f32 %v1897_v0, %v476_v12 }
  0x9a   : > { %v480_v14 = vmul.f32 %v478_v13, %v478_v13 }
  0x9c   : > { %v482_v15 = vsel %vm462_vm0, %v480_v14, 0.0  ;;  %v564_v14 = vlaneseq }
  0x9d   : > { %483 = vadd.xlane.f32.xlu1 %v482_v15  ;;  %v468_v16 = vpop.xlane.xlu0 %467 }
  0x9e   : > { %v477_v17 = vmul.f32 %v1905_v10, %v468_v16  ;;  %v565_v15 = vshrl.u32 %v564_v14, 7  ;;  %v567_v16 = vand.u32 127, %v564_v14 }
  0xa0   : > { %v479_v18 = vsub.f32 %v1901_v2, %v477_v17  ;;  %vm568_vm10 = vcmp.le.s32.totalorder %v567_v16, %v565_v15  ;;  %v1761_v17 = vmov -1e+09  }
  0xa2   : > { %v481_v19 = vmul.f32 %v479_v18, %v479_v18 }
  0xa4   : > { %v485_v20 = vsel %vm462_vm0, %v481_v19, 0.0 }
  0xa5   : > { %486 = vadd.xlane.f32.xlu1 %v485_v20 }
 0x110   : > { %v484_v22 = vpop.xlane.xlu1 %483 }
 0x111   : > { %v488_v24 = vmul.f32 %v484_v22, %v1905_v10 }
 0x113   : > { %v490_v25 = vadd.f32 1e-05, %v488_v24 }
 0x115   : > { %1609 = vrsqrt.f32 %v490_v25  ;;  %vm498_vm3 = vweird.f32 %v490_v25 }
 0x118   : > { %v487_v26 = vpop.xlane.xlu1 %486 }
 0x119   : > { %v489_v27 = vmul.f32 %v487_v26, %v1905_v10 }
 0x11b   : > { %v1610_v28 = vpop.eup %1609  ;;  %v491_v29 = vadd.f32 1e-05, %v489_v27 }
 0x11c   : > { %v493_v30 = vmul.f32 %v1610_v28, %v490_v25  ;;  %vm499_vm2 = vweird.f32 %v1610_v28 }
 0x11d   : > { %1611 = vrsqrt.f32 %v491_v29  ;;  %vm500_vm4 = vmor %vm498_vm3, %vm499_vm2  ;;  %vm508_vm6 = vweird.f32 %v491_v29 }
 0x11e   : > { %v494_v31 = vmul.f32 %v1610_v28, %v493_v30 }
 0x120   : > { %v495_v32 = vmul.f32 0.5, %v494_v31 }
 0x122   : > { %v496_v33 = vsub.f32 1.5, %v495_v32 }
 0x123   : > { %v1612_v34 = vpop.eup %1611 }
 0x124   : > { %v497_v35 = vmul.f32 %v1610_v28, %v496_v33  ;;  %v503_v36 = vmul.f32 %v1612_v34, %v491_v29  ;;  %vm509_vm5 = vweird.f32 %v1612_v34 }
 0x125   : > { %vm510_vm7 = vmor %vm508_vm6, %vm509_vm5 }
 0x126   : > { %v504_v37 = vmul.f32 %v1612_v34, %v503_v36  ;;  %v501_v38 = vsel %vm500_vm4, %v1610_v28, %v497_v35 }
 0x127   : > { %v512_v41 = vmul.f32 %v501_v38, %v478_v13 }
 0x128   : > { %v505_v39 = vmul.f32 0.5, %v504_v37 }
 0x129   : > { %v517_v46 = vmul.f32 %v1599_v42, %v512_v41 }
 0x12a   : > { %v506_v40 = vsub.f32 1.5, %v505_v39 }
 0x12b   : > { %v522_v49 = vadd.f32 %v1600_v47, %v517_v46 }
 0x12c   : > { %v507_v43 = vmul.f32 %v1612_v34, %v506_v40 }
 0x12e   : > { %v511_v44 = vsel %vm510_vm7, %v1612_v34, %v507_v43 }
 0x12f   : > { %v513_v45 = vmul.f32 %v511_v44, %v479_v18  ;;  %v1949_v18 = vsel %vm568_vm10, 0.0, %v1761_v17 }
 0x131   : > { %v518_v48 = vmul.f32 %v1599_v42, %v513_v45 }
 0x133   : > { %v523_v50 = vadd.f32 %v1600_v47, %v518_v48 }
 0x135   : > { %v524_v51 = vpack.c.bf16 %v523_v50, %v522_v49 }
 0x137   : > { %1452 = vmatmul.msk.bf16.vlgmr.msra.gmra.mxu0 %vm462_vm0, %v524_v51 }
 0x1b4   : > { %v557_v53 = vpop.f32.mrf.mxu0 }
 0x1b5   : > { %v558_v54 = vadd.f32 %v1601_v52, %v557_v53 }
 0x1b7   : > { %v562_v55 = vpack.c.bf16 %v558_v54, %v558_v54 }
 0x1b9   : > { %v571_v56 = vunpack.c.l.b16 %v562_v55 }
 0x1bb   : > { %v1928_v57 = vpack.c.b16 %v571_v56, %v571_v56 }
 0x1bc   : > { %v559_v58 = vpop.f32.mrf.mxu0 }
 0x1bd   : > { %v560_v59 = vadd.f32 %v1601_v52, %v559_v58  ;;  %573 = vrot.lane.b32.xlu0 %v1928_v57, %s1757_s20  ;;  %690 = vrot.lane.b32.xlu2 %v1928_v57, %s1758_s17 }
 0x1bf   : > { %v563_v60 = vpack.c.bf16 %v560_v59, %v560_v59 }
 0x1c1   : > { %v596_v61 = vunpack.c.l.b16 %v563_v60 }
 0x1c3   : > { %v1932_v62 = vpack.c.b16 %v596_v61, %v596_v61 }
 0x1c5   : > { %598 = vrot.lane.b32.xlu1 %v1932_v62, %s1757_s20  ;;  %688 = vrot.lane.b32.xlu2 %v1928_v57, %s1759_s21  ;;  %s447_s20 = sand.u32 1, %s1745_s26  }
 0x1cd   : > { %758 = vrot.lane.b32.xlu1 %v1928_v57, %s1760_s22  ;;  %713 = vrot.lane.b32.xlu2 %v1932_v62, %s1758_s17 }
 0x1d5   : > { %711 = vrot.lane.b32.xlu2 %v1932_v62, %s1759_s21  ;;  %s1767_s21 = smov 104  }
 0x217   : > { %v691_v63 = vpop.permute.xlu2 %690 }
 0x218   : > { %v696_v1 = vsel %vm575_vm8, %v691_v63, 0 }
 0x219   : > { %705 = vmatpush.bf16.xpose.msrb.mxu0 %v696_v1 }
 0x21f   : > { %v689_v3 = vpop.permute.xlu2 %688 }
 0x220   : > { %1457 = vmatmul.msk.bf16.vlgmr.msrb.gmra.mxu0 %vm575_vm8, %v689_v3 }
 0x227   : > { %v714_v4 = vpop.permute.xlu2 %713 }
 0x228   : > { %v719_v5 = vsel %vm575_vm8, %v714_v4, 0 }
 0x229   : > { %728 = vmatpush.bf16.xpose.msra.mxu1 %v719_v5 }
 0x22f   : > { %v574_v6 = vpop.permute.xlu0 %573  ;;  %v712_v7 = vpop.permute.xlu2 %711 }
 0x230   : > { %1458 = vmatmul.msk.bf16.vlgmr.msra.gmra.mxu1 %vm575_vm8, %v712_v7  ;;  %v580_v8 = vsel %vm575_vm8, %v574_v6, 0  ;;  %v801_v6 = vld [vmem:[%s2149_s5 + $0x4] sm:$0xf] }
 0x231   : > { %589 = vmatpush.bf16.xpose.msra.mxu2 %v580_v8  ;;  %v806_v7 = vsel %vm648_vm9, %v801_v6, 0 }
 0x232   : > { %815 = vmatpush.bf16.msra.mxu0 %v806_v7 }
 0x237   : > { %v599_v9 = vpop.permute.xlu1 %598 }
 0x238   : > { %1453 = vmatmul.msk.bf16.vlgmr.msra.gmra.mxu2 %vm575_vm8, %v562_v55  ;;  %v604_v11 = vsel %vm575_vm8, %v599_v9, 0 }
 0x239   : > { %613 = vmatpush.bf16.xpose.msrb.mxu2 %v604_v11 }
 0x23f   : > { %v759_v12 = vpop.permute.xlu1 %758 }
 0x240   : > { %v764_v13 = vsel %vm648_vm9, %v759_v12, 0 }
 0x241   : > { %773 = vmatpush.bf16.msra.mxu2 %v764_v13 }
 0x248   : > { %1454 = vmatmul.msk.bf16.vlgmr.msrb.gmra.mxu2 %vm575_vm8, %v563_v60 }
 0x29d   : > { %v707_v19 = vpop.f32.mrf.mxu0 }
 0x29e   : > { %v708_v20 = vadd.f32 %v707_v19, %v1949_v18 }
 0x2a0   : > { %v734_v21 = vsel %vm575_vm8, %v708_v20, -inf }
 0x2a1   : > { %735 = vmax.xlane.f32.xlu2 %v734_v21 }
 0x2a5   : > { %v709_v22 = vpop.f32.mrf.mxu0 }
 0x2ad   : > { %v730_v23 = vpop.f32.mrf.mxu1 }
 0x2ae   : > { %v731_v33 = vadd.f32 %v730_v23, %v1949_v18 }
 0x2b0   : > { %v737_v34 = vsel %vm575_vm8, %v731_v33, -inf }
 0x2b5   : > { %v732_v24 = vpop.f32.mrf.mxu1 }
 0x2b9   : > { %844 = vrot.lane.b32.xlu2 %v1928_v57, %s1762_s23 }
 0x2bb   : > { %v591_v25 = vpop.f32.mrf.mxu2 }
 0x2bc   : > { %v592_v26 = vadd.f32 %v591_v25, %v1949_v18 }
 0x2be   : > { %v619_v27 = vsel %vm575_vm8, %v592_v26, -inf }
 0x2bf   : > { %620 = vmax.xlane.f32.xlu1 %v619_v27 }
 0x2c3   : > { %v593_v28 = vpop.f32.mrf.mxu2 }
 0x2cb   : > { %v615_v29 = vpop.f32.mrf.mxu2 }
 0x2cc   : > { %v616_v30 = vadd.f32 %v615_v29, %v1949_v18 }
 0x2ce   : > { %v622_v31 = vsel %vm575_vm8, %v616_v30, -inf }
 0x2cf   : > { %623 = vmax.xlane.f32.xlu1 %v622_v31 }
 0x2d3   : > { %v617_v32 = vpop.f32.mrf.mxu2 }
 0x2e2   : > { %738 = vmax.xlane.f32.xlu2 %v737_v34 }
 0x2e8   : > { %643 = vrot.lane.b32.xlu1 %v1928_v57, %s1763_s24 }
 0x2fa   : > { %665 = vrot.lane.b32.xlu2 %v1932_v62, %s1763_s24  ;;  %s1768_s24 = smov 40  }
 0x302   : > { %867 = vrot.lane.b32.xlu2 %v1932_v62, %s1762_s23  ;;  %s1533_s23 = sshll.u32 %s1862_s29, 4  ;;  %s1346_s29 = scalar_lea.sflag [#allocation4], %s447_s20 }
 0x314   : > { %v736_v35 = vpop.xlane.xlu2 %735 }
 0x315   : > { %v740_v36 = vsub.f32 %v708_v20, %v736_v35 }
 0x317   : > { %v742_v37 = vmul.f32 1.442695, %v740_v36 }
 0x319   : > { %1613 = vpow2.f32 %v742_v37  ;;  %v687_v37 = vld [vmem:[%s2149_s5] sm:$0xf] }
 0x31c   : > { %v845_v38 = vpop.permute.xlu2 %844 }
 0x31d   : > { %v850_v39 = vsel %vm575_vm8, %v845_v38, 0  ;;  %v826_v38 = vsel %vm648_vm9, %v687_v37, 0 }
 0x31e   : > { %859 = vmatpush.bf16.xpose.msrb.mxu2 %v850_v39  ;;  %835 = vmatpush.bf16.msrb.mxu1 %v826_v38 }
 0x31f   : > { %v1614_v40 = vpop.eup %1613 }
 0x320   : > { %v746_v41 = vsel %vm575_vm8, %v1614_v40, 0.0 }
 0x321   : > { %747 = vadd.xlane.f32.xlu0 %v746_v41 }
 0x332   : > { %v621_v42 = vpop.xlane.xlu1 %620 }
 0x333   : > { %v625_v47 = vsub.f32 %v592_v26, %v621_v42 }
 0x335   : > { %842 = vrot.lane.b32.xlu0 %v1928_v57, %s1764_s30  ;;  %v627_v49 = vmul.f32 1.442695, %v625_v47 }
 0x342   : > { %v624_v43 = vpop.xlane.xlu1 %623 }
 0x343   : > { %v626_v44 = vsub.f32 %v616_v30, %v624_v43 }
 0x345   : > { %v629_v45 = vmul.f32 1.442695, %v626_v44 }
 0x347   : > { %1615 = vpow2.f32 %v629_v45 }
 0x348   : > { %1617 = vpow2.f32 %v627_v49 }
 0x34d   : > { %v1616_v46 = vpop.eup %1615 }
 0x34e   : > { %v634_v48 = vsel %vm575_vm8, %v1616_v46, 0.0  ;;  %v1618_v54 = vpop.eup %1617 }
 0x34f   : > { %635 = vadd.xlane.f32.xlu1 %v634_v48  ;;  %v631_v58 = vsel %vm575_vm8, %v1618_v54, 0.0 }
 0x355   : > { %v739_v50 = vpop.xlane.xlu2 %738 }
 0x356   : > { %v741_v51 = vsub.f32 %v731_v33, %v739_v50 }
 0x358   : > { %v744_v52 = vmul.f32 1.442695, %v741_v51 }
 0x35a   : > { %v644_v53 = vpop.permute.xlu1 %643  ;;  %1619 = vpow2.f32 %v744_v52 }
 0x35b   : > { %v650_v55 = vsel %vm648_vm9, %v644_v53, 0 }
 0x35c   : > { %659 = vmatpush.bf16.msra.mxu3 %v650_v55 }
 0x35d   : > { %v666_v56 = vpop.permute.xlu2 %665 }
 0x35e   : > { %v671_v59 = vsel %vm648_vm9, %v666_v56, 0 }
 0x35f   : > { %632 = vadd.xlane.f32.xlu0 %v631_v58 }
 0x360   : > { %680 = vmatpush.bf16.msrb.mxu3 %v671_v59  ;;  %v1620_v60 = vpop.eup %1619 }
 0x361   : > { %v749_v61 = vsel %vm575_vm8, %v1620_v60, 0.0 }
 0x365   : > { %v868_v21 = vpop.permute.xlu2 %867 }
 0x366   : > { %v873_v25 = vsel %vm575_vm8, %v868_v21, 0 }
 0x367   : > { %750 = vadd.xlane.f32.xlu0 %v749_v61 }
 0x368   : > { %865 = vrot.lane.b32.xlu1 %v1932_v62, %s1764_s30 }
 0x370   : > { %912 = vrot.lane.b32.xlu1 %v1928_v57, %s1765_s15 }
 0x378   : > { %980 = vrot.lane.b32.xlu1 %v1928_v57, %s1766_s16 }
 0x37b   : > { %779 = vrot.lane.b32.xlu0 %v1932_v62, %s1760_s22  ;;  %s1441_s22 = sshll.u32 %s447_s20, 4 }
 0x37c   : > { %s449_s0 = scalar_lea.vmem [#allocation5], %s1441_s22 }
 0x380   : > { %1003 = vrot.lane.b32.xlu1 %v1932_v62, %s1766_s16  ;;  %s1358_s16 = sshll.u32 %s449_s0, 4  ;;  %s1359_s16 = int_to_ptr.vmem [resolvable:$true] %s1358_s16 }
 0x394   : > { %v748_v63 = vpop.xlane.xlu0 %747 }
 0x395   : > { %1621 = vrcp.f32 %v748_v63 }
 0x39b   : > { %v1622_v1 = vpop.eup %1621 }
 0x39c   : > { %v754_v3 = vmul.f32 %v1622_v1, %v1614_v40 }
 0x39e   : > { %v756_v4 = vpack.c.bf16 %v754_v3, %v754_v3 }
 0x3a0   : > { %1459 = vmatmul.msk.bf16.vlgmr.msra.gmra.mxu2 %vm575_vm8, %v756_v4 }
 0x3a7   : > { %v843_v5 = vpop.permute.xlu0 %842 }
 0x3b0   : > { %1463 = vmatmul.msk.bf16.vlgmr.msrb.gmra.mxu2 %vm575_vm8, %v843_v5 }
 0x3c2   : > { %v636_v8 = vpop.xlane.xlu1 %635 }
 0x3d2   : > { %v633_v9 = vpop.xlane.xlu0 %632 }
 0x3d3   : > { %1623 = vrcp.f32 %v633_v9 }
 0x3d4   : > { %1625 = vrcp.f32 %v636_v8 }
 0x3d9   : > { %v1624_v11 = vpop.eup %1623 }
 0x3da   : > { %v866_v12 = vpop.permute.xlu1 %865  ;;  %v639_v13 = vmul.f32 %v1624_v11, %v1618_v54  ;;  %v1626_v17 = vpop.eup %1625 }
 0x3db   : > { %v751_v19 = vpop.xlane.xlu0 %750  ;;  %v640_v20 = vmul.f32 %v1626_v17, %v1616_v46 }
 0x3dc   : > { %v641_v14 = vpack.c.bf16 %v639_v13, %v639_v13  ;;  %1627 = vrcp.f32 %v751_v19 }
 0x3dd   : > { %v642_v22 = vpack.c.bf16 %v640_v20, %v640_v20 }
 0x3de   : > { %1455 = vmatmul.msk.bf16.vlgmr.msra.gmra.mxu3 %vm575_vm8, %v641_v14 }
 0x3e2   : > { %v913_v15 = vpop.permute.xlu1 %912  ;;  %v1628_v26 = vpop.eup %1627 }
 0x3e3   : > { %v918_v16 = vsel %vm648_vm9, %v913_v15, 0  ;;  %v755_v27 = vmul.f32 %v1628_v26, %v1620_v60 }
 0x3e4   : > { %927 = vmatpush.bf16.msrb.mxu0 %v918_v16 }
 0x3e5   : > { %v757_v29 = vpack.c.bf16 %v755_v27, %v755_v27 }
 0x3ea   : > { %v981_v28 = vpop.permute.xlu1 %980 }
 0x3eb   : > { %v986_v30 = vsel %vm575_vm8, %v981_v28, 0 }
 0x3ed   : > { %v780_v23 = vpop.permute.xlu0 %779 }
 0x3ee   : > { %v785_v24 = vsel %vm648_vm9, %v780_v23, 0  ;;  %1456 = vmatmul.msk.bf16.vlgmr.msrb.gmra.mxu3 %vm575_vm8, %v642_v22 }
 0x3ef   : > { %794 = vmatpush.bf16.msra.mxu3 %v785_v24 }
 0x3f2   : > { %v1004_v44 = vpop.permute.xlu1 %1003 }
 0x3f3   : > { %882 = vmatpush.bf16.xpose.msrb.mxu3 %v873_v25  ;;  %v1009_v47 = vsel %vm575_vm8, %v1004_v44, 0 }
 0x3fe   : > { %1460 = vmatmul.msk.bf16.vlgmr.msra.gmra.mxu3 %vm575_vm8, %v757_v29 }
 0x3ff   : > { %995 = vmatpush.bf16.xpose.msra.mxu3 %v986_v30 }
 0x40e   : > { %1464 = vmatmul.msk.bf16.vlgmr.msrb.gmra.mxu3 %vm575_vm8, %v866_v12 }
 0x423   : > { %v775_v31 = vpop.f32.mrf.mxu2 }
 0x42b   : > { %v777_v32 = vpop.f32.mrf.mxu2 }
 0x433   : > { %v861_v33 = vpop.f32.mrf.mxu2 }
 0x434   : > { %v862_v34 = vadd.f32 %v861_v33, %v1949_v18 }
 0x436   : > { %v888_v35 = vsel %vm575_vm8, %v862_v34, -inf }
 0x437   : > { %889 = vmax.xlane.f32.xlu0 %v888_v35 }
 0x43b   : > { %v863_v36 = vpop.f32.mrf.mxu2 }
 0x43c   : > { %v955_v36 = vld [vmem:[%s2149_s5 + $0x8] sm:$0xf] }
 0x43d   : > { %v960_v37 = vsel %vm648_vm9, %v955_v36, 0 }
 0x43e   : > { %969 = vmatpush.bf16.msra.mxu2 %v960_v37 }
 0x44b   : > { %978 = vrot.lane.b32.xlu0 %v1928_v57, %s1767_s21 }
 0x461   : > { %v661_v39 = vpop.f32.mrf.mxu3 }
 0x469   : > { %v663_v40 = vpop.f32.mrf.mxu3 }
 0x471   : > { %v682_v41 = vpop.f32.mrf.mxu3 }
 0x472   : > { %v686_v42 = vpack.c.bf16 %v682_v41, %v661_v39 }
 0x474   : > { %1462 = vmatmul.msk.bf16.vlgmr.msrb.gmra.mxu1 %vm575_vm8, %v686_v42 }
 0x479   : > { %v684_v43 = vpop.f32.mrf.mxu3 }
 0x481   : > { %v796_v45 = vpop.f32.mrf.mxu3 }
 0x482   : > { %v800_v46 = vpack.c.bf16 %v796_v45, %v775_v31 }
 0x484   : > { %1461 = vmatmul.msk.bf16.vlgmr.msra.gmra.mxu0 %vm575_vm8, %v800_v46 }
 0x485   : > { %1018 = vmatpush.bf16.xpose.msra.mxu0 %v1009_v47 }
 0x489   : > { %v798_v48 = vpop.f32.mrf.mxu3 }
 0x491   : > { %v884_v49 = vpop.f32.mrf.mxu3 }
 0x492   : > { %v885_v50 = vadd.f32 %v884_v49, %v1949_v18 }
 0x494   : > { %v891_v51 = vsel %vm575_vm8, %v885_v50, -inf }
 0x495   : > { %892 = vmax.xlane.f32.xlu1 %v891_v51 }
 0x499   : > { %v886_v52 = vpop.f32.mrf.mxu3 }
 0x4aa   : > { %v890_v53 = vpop.xlane.xlu0 %889 }
 0x4ab   : > { %v894_v54 = vsub.f32 %v862_v34, %v890_v53 }
 0x4ad   : > { %v896_v55 = vmul.f32 1.442695, %v894_v54 }
 0x4af   : > { %1629 = vpow2.f32 %v896_v55 }
 0x4b5   : > { %v1630_v56 = vpop.eup %1629 }
 0x4b6   : > { %v900_v58 = vsel %vm575_vm8, %v1630_v56, 0.0 }
 0x4b7   : > { %901 = vadd.xlane.f32.xlu2 %v900_v58 }
 0x4bd   : > { %v979_v59 = vpop.permute.xlu0 %978 }
 0x4be   : > { %1468 = vmatmul.msk.bf16.vlgmr.msra.gmra.mxu3 %vm575_vm8, %v979_v59 }
 0x4cf   : > { %1001 = vrot.lane.b32.xlu2 %v1932_v62, %s1767_s21 }
 0x4d7   : > { %933 = vrot.lane.b32.xlu2 %v1932_v62, %s1765_s15  ;;  %s1357_s15 = scalar_lea.hbm %s2157_s13, %s1533_s23 }
 0x4d8   : > { %s1360_s1 = sshll.u32 %s1357_s15, 4  ;;  %s1361_s1 = int_to_ptr.hbm [resolvable:$true] %s1360_s1 }
 0x4d9   : > { %s1701_s17 = sshra.s32 %s1361_s1, 4  ;;  %s1702_s17 = int_to_ptr.hbm [resolvable:$true] %s1701_s17 }
 0x4da   : > { %s1703_s21 = scalar_lea.hbm %s1702_s17, 16  ;;  %p1708_p3 = scmp.lt.s32.totalorder %s1702_s17, %s2157_s13 }
 0x4db   : > { %p1704_p0 = scmp.ne.s32.totalorder %s1702_s17, %s1703_s21 }
 0x4dd   : > { %p1705_p1 = pnand %p1704_p0, %p1879_p5 }
 0x4df   : > { %p1706_p2 = pneg %p1705_p1 }
 0x4f1   : > { %v837_v60 = vpop.f32.mrf.mxu1 }
 0x4f9   : > { %v839_v38 = vpop.f32.mrf.mxu1 }
 0x501   : > { %v817_v61 = vpop.f32.mrf.mxu0 }
 0x502   : > { %v2011_v63 = vadd.f32 %v837_v60, %v817_v61 }
 0x508   : > { %v893_v1 = vpop.xlane.xlu1 %892 }
 0x509   : > { %v895_v3 = vsub.f32 %v885_v50, %v893_v1  ;;  %v2020_v24 = vpop.f32.mrf.mxu0 }
 0x50b   : > { %v898_v4 = vmul.f32 1.442695, %v895_v3 }
 0x50d   : > { %1631 = vpow2.f32 %v898_v4 }
 0x513   : > { %v1632_v5 = vpop.eup %1631 }
 0x514   : > { %v903_v6 = vsel %vm575_vm8, %v1632_v5, 0.0 }
 0x515   : > { %904 = vadd.xlane.f32.xlu0 %v903_v6 }
 0x52a   : > { %v902_v7 = vpop.xlane.xlu2 %901 }
 0x52b   : > { %1633 = vrcp.f32 %v902_v7 }
 0x531   : > { %v1634_v8 = vpop.eup %1633 }
 0x532   : > { %v908_v9 = vmul.f32 %v1634_v8, %v1630_v56  ;;  %v1002_v11 = vpop.permute.xlu2 %1001  ;;  %v1602_v8 = vld [vmem:[%s2150_s6] ss:$0 sm:$0xff] }
 0x534   : > { %v910_v12 = vpack.c.bf16 %v908_v9, %v908_v9 }
 0x536   : > { %1465 = vmatmul.msk.bf16.vlgmr.msrb.gmra.mxu0 %vm575_vm8, %v910_v12 }
 0x53a   : > { %v934_v13 = vpop.permute.xlu2 %933 }
 0x53b   : > { %v939_v14 = vsel %vm648_vm9, %v934_v13, 0 }
 0x53c   : > { %948 = vmatpush.bf16.msra.mxu1 %v939_v14 }
 0x541   : > { %v997_v15 = vpop.f32.mrf.mxu3 }
 0x542   : > { %v998_v16 = vadd.f32 %v997_v15, %v1949_v18 }
 0x544   : > { %v1024_v17 = vsel %vm575_vm8, %v998_v16, -inf }
 0x545   : > { %1025 = vmax.xlane.f32.xlu1 %v1024_v17 }
 0x546   : > { %1469 = vmatmul.msk.bf16.vlgmr.msra.gmra.mxu0 %vm575_vm8, %v1002_v11  ;;  %v840_v11 = vadd.f32 %v839_v38, %v2020_v24 }
 0x549   : > { %v999_v19 = vpop.f32.mrf.mxu3 }
 0x588   : > { %v905_v20 = vpop.xlane.xlu0 %904 }
 0x589   : > { %1635 = vrcp.f32 %v905_v20 }
 0x58f   : > { %v1636_v21 = vpop.eup %1635 }
 0x590   : > { %v909_v22 = vmul.f32 %v1636_v21, %v1632_v5 }
 0x592   : > { %v911_v23 = vpack.c.bf16 %v909_v22, %v909_v22 }
 0x594   : > { %1466 = vmatmul.msk.bf16.vlgmr.msra.gmra.mxu1 %vm575_vm8, %v911_v23 }
 0x5b3   : > { %v929_v25 = vpop.f32.mrf.mxu0 }
 0x5b8   : > { %v1026_v26 = vpop.xlane.xlu1 %1025 }
 0x5b9   : > { %v1030_v27 = vsub.f32 %v998_v16, %v1026_v26 }
 0x5bb   : > { %v1032_v28 = vmul.f32 1.442695, %v1030_v27  ;;  %v931_v29 = vpop.f32.mrf.mxu0 }
 0x5bc   : > { %v1524_v29 = vld [vmem:[%s2153_s9 + $0x8] sm:$0xff] }
 0x5bd   : > { %1637 = vpow2.f32 %v1032_v28  ;;  %1208 = vmatpush.bf16.msrb.mxu0 %v1524_v29 }
 0x5c3   : > { %v1638_v30 = vpop.eup %1637  ;;  %v1020_v31 = vpop.f32.mrf.mxu0 }
 0x5c4   : > { %v1021_v32 = vadd.f32 %v1020_v31, %v1949_v18  ;;  %v1036_v33 = vsel %vm575_vm8, %v1638_v30, 0.0 }
 0x5c5   : > { %1037 = vadd.xlane.f32.xlu0 %v1036_v33  ;;  %v1523_v33 = vld [vmem:[%s2153_s9] sm:$0xff] }
 0x5c6   : > { %v1027_v34 = vsel %vm575_vm8, %v1021_v32, -inf  ;;  %1209 = vmatpush.bf16.msrb.mxu0 %v1523_v33 }
 0x5c7   : > { %1028 = vmax.xlane.f32.xlu2 %v1027_v34 }
 0x5cb   : > { %v1022_v35 = vpop.f32.mrf.mxu0 }
 0x5d9   : > { %1048 = vrot.lane.b32.xlu0 %v1928_v57, %s1768_s24 }
 0x611   : > { %v950_v39 = vpop.f32.mrf.mxu1 }
 0x612   : > { %v954_v18 = vpack.c.bf16 %v950_v39, %v929_v25 }
 0x614   : > { %1467 = vmatmul.msk.bf16.vlgmr.msra.gmra.mxu2 %vm575_vm8, %v954_v18 }
 0x619   : > { %v952_v40 = vpop.f32.mrf.mxu1 }
 0x638   : > { %v1038_v44 = vpop.xlane.xlu0 %1037 }
 0x63a   : > { %v1029_v41 = vpop.xlane.xlu2 %1028 }
 0x63b   : > { %v1031_v42 = vsub.f32 %v1021_v32, %v1029_v41 }
 0x63d   : > { %v1034_v43 = vmul.f32 1.442695, %v1031_v42 }
 0x63f   : > { %1639 = vpow2.f32 %v1034_v43 }
 0x640   : > { %1641 = vrcp.f32 %v1038_v44 }
 0x645   : > { %v1640_v57 = vpop.eup %1639 }
 0x646   : > { %v1039_v45 = vsel %vm575_vm8, %v1640_v57, 0.0  ;;  %v1642_v46 = vpop.eup %1641 }
 0x647   : > { %1040 = vadd.xlane.f32.xlu1 %v1039_v45  ;;  %v1044_v47 = vmul.f32 %v1642_v46, %v1638_v30 }
 0x649   : > { %v1046_v50 = vpack.c.bf16 %v1044_v47, %v1044_v47 }
 0x64b   : > { %v1049_v48 = vpop.permute.xlu0 %1048 }
 0x64c   : > { %v1054_v49 = vsel %vm648_vm9, %v1049_v48, 0 }
 0x64d   : > { %1063 = vmatpush.bf16.msrb.mxu1 %v1054_v49 }
 0x650   : > { %1470 = vmatmul.msk.bf16.vlgmr.msrb.gmra.mxu1 %vm575_vm8, %v1046_v50  ;;  %v1604_v50 = vld [vmem:[%s2152_s8] ss:$0 sm:$0xff] }
 0x660   : > { %1069 = vrot.lane.b32.xlu1 %v1932_v62, %s1768_s24  ;;  %v1091_v62 = vld [vmem:[%s2149_s5 + $0xc] sm:$0xf]  ;;  %s1707_s24 = scalar_lea.hbm %s2157_s13, 32 }
 0x661   : > { %v1096_v1 = vsel %vm648_vm9, %v1091_v62, 0  ;;  %v1605_v62 = vld [vmem:[%s2154_s10] ss:$0 sm:$0xff]  ;;  %p1709_p4 = scmp.lt.s32.totalorder %s1707_s24, %s1703_s21 }
 0x662   : > { %1105 = vmatpush.bf16.msrb.mxu3 %v1096_v1  ;;  %v1528_v1 = vld [vmem:[%s2155_s11 + $0x18] sm:$0xff] }
 0x663   : > { %p1710_p7 = por %p1709_p4, %p1708_p3 }
 0x665   : > { %p1711_p8 = pnand %p1710_p7, %p1706_p2 }
 0x697   : > { %v971_v51 = vpop.f32.mrf.mxu2 }
 0x698   : > { %v976_v52 = vadd.f32 %v971_v51, %v2011_v63 }
 0x69f   : > { %v973_v63 = vpop.f32.mrf.mxu2 }
 0x6a0   : > { %v977_v13 = vadd.f32 %v973_v63, %v840_v11  ;;  %v1525_v11 = vld [vmem:[%s2155_s11] sm:$0xff] }
 0x6ba   : > { %v1041_v53 = vpop.xlane.xlu1 %1040 }
 0x6bb   : > { %1643 = vrcp.f32 %v1041_v53 }
 0x6c1   : > { %v1644_v55 = vpop.eup %1643 }
 0x6c2   : > { %v1045_v56 = vmul.f32 %v1644_v55, %v1640_v57 }
 0x6c4   : > { %v1047_v60 = vpack.c.bf16 %v1045_v56, %v1045_v56 }
 0x6cd   : > { %v1065_v54 = vpop.f32.mrf.mxu1 }
 0x6d2   : > { %v1070_v58 = vpop.permute.xlu1 %1069 }
 0x6d3   : > { %v1075_v59 = vsel %vm648_vm9, %v1070_v58, 0  ;;  %v1532_v58 = vld [vmem:[%s2155_s11 + $0x38] sm:$0xff] }
 0x6d4   : > { %1084 = vmatpush.bf16.msrb.mxu2 %v1075_v59  ;;  %1327 = vmatpush.bf16.msra.mxu1 %v1532_v58  ;;  %v1531_v59 = vld [vmem:[%s2155_s11 + $0x30] sm:$0xff] }
 0x6d5   : > { %v1067_v61 = vpop.f32.mrf.mxu1 }
 0x6d6   : > { %v1529_v61 = vld [vmem:[%s2155_s11 + $0x20] sm:$0xff] }
 0x6d7   : > { %1471 = vmatmul.msk.bf16.vlgmr.msrb.gmra.mxu2 %vm575_vm8, %v1047_v60  ;;  %v1530_v60 = vld [vmem:[%s2155_s11 + $0x28] sm:$0xff] }
 0x6d8   : > { %1328 = vmatpush.bf16.msra.mxu1 %v1531_v59 }
 0x6dc   : > { %1329 = vmatpush.bf16.msra.mxu1 %v1530_v60 }
 0x6e0   : > { %1330 = vmatpush.bf16.msra.mxu1 %v1529_v61 }
 0x6e4   : > { %1331 = vmatpush.bf16.msra.mxu1 %v1528_v1 }
 0x75a   : > { %v1086_v3 = vpop.f32.mrf.mxu2 }
 0x75b   : > { %v1090_v4 = vpack.c.bf16 %v1086_v3, %v1065_v54 }
 0x75d   : > { %1472 = vmatmul.msk.bf16.vlgmr.msrb.gmra.mxu3 %vm575_vm8, %v1090_v4  ;;  %v1527_v4 = vld [vmem:[%s2155_s11 + $0x10] sm:$0xff] }
 0x75e   : > { %1332 = vmatpush.bf16.msra.mxu1 %v1527_v4 }
 0x762   : > { %v1088_v5 = vpop.f32.mrf.mxu2 }
 0x7e0   : > { %v1107_v6 = vpop.f32.mrf.mxu3 }
 0x7e1   : > { %v1112_v7 = vadd.f32 %v1107_v6, %v976_v52 }
 0x7e3   : > { %v1114_v9 = vadd.f32 %v1112_v7, %v1897_v0  ;;  %v1526_v7 = vld [vmem:[%s2155_s11 + $0x8] sm:$0xff] }
 0x7e4   : > { %1333 = vmatpush.bf16.msra.mxu1 %v1526_v7 }
 0x7e5   : > { %v2048_v12 = vadd.f32 %v1602_v8, %v1114_v9 }
 0x7e7   : > { %v1124_v14 = vsel %vm462_vm0, %v2048_v12, 0.0 }
 0x7e8   : > { %1125 = vadd.xlane.f32.xlu2 %v1124_v14  ;;  %v1109_v15 = vpop.f32.mrf.mxu3  ;;  %1334 = vmatpush.bf16.msra.mxu1 %v1525_v11 }
 0x7e9   : > { %v1113_v16 = vadd.f32 %v1109_v15, %v977_v13 }
 0x7eb   : > { %v1115_v17 = vadd.f32 %v1113_v16, %v1901_v2 }
 0x7ed   : > { %v2053_v19 = vadd.f32 %v1602_v8, %v1115_v17 }
 0x7ef   : > { %v1127_v20 = vsel %vm462_vm0, %v2053_v19, 0.0 }
 0x7f0   : > { %1128 = vadd.xlane.f32.xlu2 %v1127_v20 }
 0x85b   : > { %v1126_v0 = vpop.xlane.xlu2 %1125 }
 0x85c   : > { %v1130_v21 = vmul.f32 %v1126_v0, %v1905_v10 }
 0x85e   : > { %v1132_v22 = vsub.f32 %v2048_v12, %v1130_v21 }
 0x860   : > { %v1134_v23 = vmul.f32 %v1132_v22, %v1132_v22 }
 0x862   : > { %v1136_v24 = vsel %vm462_vm0, %v1134_v23, 0.0 }
 0x863   : > { %1137 = vadd.xlane.f32.xlu1 %v1136_v24  ;;  %v1129_v25 = vpop.xlane.xlu2 %1128 }
 0x864   : > { %v1131_v26 = vmul.f32 %v1129_v25, %v1905_v10 }
 0x866   : > { %v1133_v2 = vsub.f32 %v2053_v19, %v1131_v26 }
 0x868   : > { %v1135_v27 = vmul.f32 %v1133_v2, %v1133_v2 }
 0x86a   : > { %v1139_v28 = vsel %vm462_vm0, %v1135_v27, 0.0 }
 0x86b   : > { %1140 = vadd.xlane.f32.xlu0 %v1139_v28 }
 0x8d6   : > { %v1138_v30 = vpop.xlane.xlu1 %1137 }
 0x8d7   : > { %v1142_v31 = vmul.f32 %v1138_v30, %v1905_v10 }
 0x8d9   : > { %v1144_v32 = vadd.f32 1e-05, %v1142_v31 }
 0x8db   : > { %1645 = vrsqrt.f32 %v1144_v32  ;;  %vm1152_vm12 = vweird.f32 %v1144_v32 }
 0x8de   : > { %v1141_v34 = vpop.xlane.xlu0 %1140 }
 0x8df   : > { %v1143_v35 = vmul.f32 %v1141_v34, %v1905_v10  ;;  %v1603_v10 = vld [vmem:[%s2151_s7] ss:$0 sm:$0xff] }
 0x8e1   : > { %v1646_v36 = vpop.eup %1645  ;;  %v1145_v37 = vadd.f32 1e-05, %v1143_v35 }
 0x8e2   : > { %v1147_v38 = vmul.f32 %v1646_v36, %v1144_v32  ;;  %vm1153_vm11 = vweird.f32 %v1646_v36 }
 0x8e3   : > { %1647 = vrsqrt.f32 %v1145_v37  ;;  %vm1154_vm13 = vmor %vm1152_vm12, %vm1153_vm11  ;;  %vm1162_vm15 = vweird.f32 %v1145_v37 }
 0x8e4   : > { %v1148_v39 = vmul.f32 %v1646_v36, %v1147_v38 }
 0x8e6   : > { %v1149_v18 = vmul.f32 0.5, %v1148_v39 }
 0x8e8   : > { %v1150_v40 = vsub.f32 1.5, %v1149_v18 }
 0x8e9   : > { %v1648_v41 = vpop.eup %1647 }
 0x8ea   : > { %v1151_v42 = vmul.f32 %v1646_v36, %v1150_v40  ;;  %v1157_v43 = vmul.f32 %v1648_v41, %v1145_v37  ;;  %vm1163_vm14 = vweird.f32 %v1648_v41 }
 0x8eb   : > { %vm1164_vm1 = vmor %vm1162_vm15, %vm1163_vm14 }
 0x8ec   : > { %v1158_v44 = vmul.f32 %v1648_v41, %v1157_v43  ;;  %v1155_v57 = vsel %vm1154_vm13, %v1646_v36, %v1151_v42 }
 0x8ed   : > { %v1166_v47 = vmul.f32 %v1155_v57, %v1132_v22 }
 0x8ee   : > { %v1159_v45 = vmul.f32 0.5, %v1158_v44 }
 0x8ef   : > { %v1171_v51 = vmul.f32 %v1603_v10, %v1166_v47 }
 0x8f0   : > { %v1160_v46 = vsub.f32 1.5, %v1159_v45 }
 0x8f1   : > { %v1176_v54 = vadd.f32 %v1604_v50, %v1171_v51 }
 0x8f2   : > { %v1161_v48 = vmul.f32 %v1648_v41, %v1160_v46 }
 0x8f4   : > { %v1165_v49 = vsel %vm1164_vm1, %v1648_v41, %v1161_v48  ;;  %v1606_v41 = vld [vmem:[%s2156_s12] ss:$0 sm:$0xff] }
 0x8f5   : > { %v1167_v52 = vmul.f32 %v1165_v49, %v1133_v2 }
 0x8f7   : > { %v1172_v53 = vmul.f32 %v1603_v10, %v1167_v52 }
 0x8f9   : > { %v1177_v55 = vadd.f32 %v1604_v50, %v1172_v53 }
 0x8fb   : > { %v1178_v56 = vpack.c.bf16 %v1177_v55, %v1176_v54 }
 0x8fd   : > { %1481 = vmatmul.msk.bf16.vlgmr.msrb.gmra.mxu0 %vm462_vm0, %v1178_v56 }
 0x97a   : > { %v1211_v63 = vpop.f32.mrf.mxu0 }
 0x97b   : > { %v1212_v3 = vadd.f32 %v1605_v62, %v1211_v63 }
 0x97d   : > { %v1482_v5 = vmul.f32 -1.702, %v1212_v3 }
 0x97f   : > { %v1220_v6 = vmul.f32 1.442695, %v1482_v5 }
 0x981   : > { %1649 = vpow2.f32 %v1220_v6 }
 0x982   : > { %v1213_v8 = vpop.f32.mrf.mxu0 }
 0x983   : > { %v1214_v9 = vadd.f32 %v1605_v62, %v1213_v8 }
 0x985   : > { %v1483_v13 = vmul.f32 -1.702, %v1214_v9 }
 0x987   : > { %v1650_v14 = vpop.eup %1649  ;;  %v1222_v15 = vmul.f32 1.442695, %v1483_v13 }
 0x988   : > { %v1224_v16 = vadd.f32 1.0, %v1650_v14 }
 0x989   : > { %1651 = vpow2.f32 %v1222_v15 }
 0x98a   : > { %1653 = vrcp.f32 %v1224_v16  ;;  %v1237_v2 = vand.u32 2147483648, %v1224_v16  ;;  %vm1231_vm3 = vweird.f32 %v1224_v16  ;;  %v1235_v27 = vand.u32 2147483647, %v1224_v16 }
 0x98c   : > { %v1238_v33 = vor.u32 1.1754944e-38, %v1237_v2  ;;  %vm1236_vm6 = vcmp.eq.f32.partialorder %v1235_v27, 8.507059e+37 }
 0x98f   : > { %v1652_v17 = vpop.eup %1651 }
 0x990   : > { %v1654_v20 = vpop.eup %1653  ;;  %v1225_v0 = vadd.f32 1.0, %v1652_v17 }
 0x991   : > { %v1227_v21 = vmul.f32 %v1654_v20, %v1224_v16  ;;  %vm1232_vm2 = vweird.f32 %v1654_v20 }
 0x992   : > { %1655 = vrcp.f32 %v1225_v0  ;;  %vm1233_vm4 = vmor %vm1231_vm3, %vm1232_vm2  ;;  %v1252_v29 = vand.u32 2147483648, %v1225_v0  ;;  %v1250_v32 = vand.u32 2147483647, %v1225_v0  ;;  %vm1246_vm7 = vweird.f32 %v1225_v0 }
 0x993   : > { %v1228_v22 = vsub.f32 1.0, %v1227_v21 }
 0x994   : > { %v1253_v36 = vor.u32 1.1754944e-38, %v1252_v29  ;;  %vm1251_vm9 = vcmp.eq.f32.partialorder %v1250_v32, 8.507059e+37 }
 0x995   : > { %v1229_v23 = vmul.f32 %v1654_v20, %v1228_v22 }
 0x997   : > { %v1230_v25 = vadd.f32 %v1654_v20, %v1229_v23 }
 0x998   : > { %v1656_v24 = vpop.eup %1655 }
 0x999   : > { %v1242_v26 = vmul.f32 %v1656_v24, %v1225_v0  ;;  %v1234_v30 = vsel %vm1233_vm4, %v1654_v20, %v1230_v25  ;;  %vm1247_vm5 = vweird.f32 %v1656_v24 }
 0x99a   : > { %v1239_v35 = vsel %vm1236_vm6, %v1238_v33, %v1234_v30  ;;  %vm1248_vm8 = vmor %vm1246_vm7, %vm1247_vm5 }
 0x99b   : > { %v1243_v28 = vsub.f32 1.0, %v1242_v26  ;;  %v1256_v39 = vmul.f32 %v1239_v35, %v1212_v3 }
 0x99d   : > { %v1244_v31 = vmul.f32 %v1656_v24, %v1243_v28 }
 0x99f   : > { %v1245_v34 = vadd.f32 %v1656_v24, %v1244_v31 }
 0x9a1   : > { %v1249_v37 = vsel %vm1248_vm8, %v1656_v24, %v1245_v34 }
 0x9a2   : > { %v1254_v38 = vsel %vm1251_vm9, %v1253_v36, %v1249_v37 }
 0x9a3   : > { %v1257_v18 = vmul.f32 %v1254_v38, %v1214_v9 }
 0x9a5   : > { %v1258_v40 = vpack.c.bf16 %v1257_v18, %v1256_v39 }
 0x9a7   : > { %1335 = vmatmul.bf16.vlgmr.msra.gmra.mxu1 %v1258_v40 }
 0xa24   : > { %v1336_v42 = vpop.f32.mrf.mxu1 }
 0xa25   : > { %v1337_v43 = vadd.f32 %v1606_v41, %v1336_v42 }
 0xa27   : > { %v1341_v44 = vadd.f32 %v1337_v43, %v2048_v12 }
 0xa29   : > { %1343 = vst.msk [vmem:[%s449_s0] sm:$0xff] %vm462_vm0, %v1341_v44 }
 0xa2c   : > { %v1338_v57 = vpop.f32.mrf.mxu1 }
 0xa2d   : > { %v1339_v45 = vadd.f32 %v1606_v41, %v1338_v57 }
 0xa2f   : > { %v1342_v46 = vadd.f32 %v1339_v45, %v2053_v19 }
 0xa31   : > { %1344 = vst.msk [vmem:[%s449_s0 + $0x8] sm:$0xff] %vm462_vm0, %v1342_v46 }
 0xa32   : > { %1714 = shalt.err (!%p1711_p8)
}
 0xa33   : > { %s1769_s20 = smov 128   ;;  %s1770_s0 = smov 8  }
 0xa34   : > { %1538 = dma.vmem_to_hbm [thread:$0]  (%p1879_p5), %s1359_s16, 256, %s1361_s1, %s1346_s29, %s1769_s20, %s1769_s20, %s1770_s0  }
 0xa35 PF: > { %p1550_p9 = scmp.ge.s32.totalorder %s1753_s28, 2  ;;  %s1375_s22 = sand.u32 1, %s1741_s25  }
 0xa36   : > { %s1376_s23 = scalar_lea.sflag [#allocation4], %s1375_s22 }
 0xa37   : > { %p1545_p10 = pnand %p1550_p9, %p1883_p6 }
 0xa39   : > { %p1546_p11 = pneg %p1545_p10 }
 0xa3b   : > { %1736 = dma.done.wait (%p1546_p11), %s1376_s23, 256  }
 0xa3c   : > { %1738 = vsyncadd (%p1546_p11), %s1376_s23, 4294967040  ;;  %s2165_s17 = sld [smem:[#allocation8_spill]]  ;;  %p24_p12 = scmp.ge.s32.totalorder %s1866_s14, 4  }
 0xa3d   : > { %s2166_s25 = smov %s1745_s26  ;;  %s2167_s26 = smov %s1749_s27 }
 0xa3e   : > { %s2169_s28 = smov %s1866_s14  ;;  %26 = sbr.rel (!%p24_p12) target bundleno = 7 (0x7), region = 112 }
 0xa42   : > { %s2168_s27 = smov %s2165_s17 }
 0xa43   :  { %1382 = vsyncpa [#allocation3], 1 }
 0xa44   :  { %1384 = vsyncpa [#allocation3 + $0x1], 1 }
 0xa45   :  { %1385 = vsyncpa [#allocation4], 1 }
 0xa46   :  { %1387 = vsyncpa [#allocation4 + $0x1], 1 }

</bundles_post_ra>
